<compile_context>
chip_gen: v7x
topology: tpu7x:2x2x1
jax: 0.10.0
libtpu: 0.0.40
codegen_flags: <defaults>
</compile_context>

<pallas_src>
import functools

import jax
import jax.numpy as jnp
import numpy as np
from jax.experimental import pallas as pl
from jax.experimental.pallas import tpu as pltpu


def _round_up(v, m):
    return ((v + m - 1) // m) * m


def _sagan_attn_kernel(x_ref, w_ref, b_ref, gamma_ref,
                       out_ref, attn_ref, qkv_ref, *, tq, chp, cp):
    """One (batch b, query-tile qi) grid step.

    x_ref    : (1, N, Cp)   padded channels-last input for batch b (re-DMA'd only on b change)
    w_ref    : (Cp, F)      fused [Wq|Wk|Wv]^T, F = 2*Chp + Cp
    b_ref    : (1, F)       fused bias
    gamma_ref: (1, 1) SMEM  scalar gamma
    out_ref  : (1, TQ, Cp)  output tile (gamma*attn@v + x)
    attn_ref : (1, TQ, N)   attention tile
    qkv_ref  : (N, F) VMEM  cached fused projection for batch b
    """
    qi = pl.program_id(1)

    # Compute the fused q/k/v projection for the whole batch element once, then reuse
    # it for every query tile of this batch element.
    @pl.when(qi == 0)
    def _():
        x_full = x_ref[0]                                            # (N, Cp)
        qkv_ref[...] = (
            jnp.dot(x_full, w_ref[...], preferred_element_type=jnp.float32)
            + b_ref[...]
        )

    row0 = pl.multiple_of(qi * tq, tq)

    q = qkv_ref[pl.ds(row0, tq), pl.ds(0, chp)]                      # (TQ, Chp)
    k = qkv_ref[:, pl.ds(chp, chp)]                                  # (N,  Chp)
    v = qkv_ref[:, pl.ds(2 * chp, cp)]                               # (N,  Cp)

    # scores = q @ k^T with the transpose folded into the MXU op (NT dot_general).
    scores = jax.lax.dot_general(
        q, k, dimension_numbers=(((1,), (1,)), ((), ())),
        preferred_element_type=jnp.float32)                          # (TQ, N)

    # Numerically stable softmax over the last dim; reciprocal on the EUP.
    m = jnp.max(scores, axis=-1, keepdims=True)
    e = jnp.exp(scores - m)
    denom = jnp.sum(e, axis=-1, keepdims=True)
    attn = e * pl.reciprocal(denom, approx=True)                     # (TQ, N)

    out = jnp.dot(attn, v, preferred_element_type=jnp.float32)       # (TQ, Cp)

    x_tile = x_ref[0, pl.ds(row0, tq), :]                            # (TQ, Cp)
    gamma = gamma_ref[0, 0]
    out_ref[0] = gamma * out + x_tile
    attn_ref[0] = attn


def _choose_tq(n, cp, chp):
    """Largest query-tile (<=512) whose per-step VMEM footprint fits the budget."""
    try:
        vmem_cap = int(pltpu.get_tpu_info().vmem_capacity_bytes)
    except Exception:                                   # conservative (v7x) fallback
        vmem_cap = 64 * 1024 * 1024
    budget = int(vmem_cap * 0.7)
    f = 2 * chp + cp
    for t in (512, 256, 128):
        if n % t != 0 or t >= n:
            continue
        # double-buffered attn/out blocks + scores/exp temporaries + qkv scratch + x block
        need = 4 * (8 * t * n + 2 * t * cp + n * f + 2 * n * cp + 2 * cp * f)
        if need <= budget:
            return t
    return n  # tiny / irregular N: single tile per batch element


def sagan_self_attention(x_nchw, wq, bq, wk, bk, wv, bv, gamma):
    """Forward pass of the SAGAN self_attention module.

    Args:
      x_nchw: (B, C, W, H) float32 input (PyTorch NCHW convention).
      wq, wk: (C//2, C) 1x1-conv weights (kernel dims squeezed).
      wv:     (C, C)    1x1-conv weight.
      bq, bk: (C//2,) biases;  bv: (C,) bias.
      gamma:  scalar (shape (1,)) learnable mixing coefficient.

    Returns:
      (output (B, C, W, H), attention_score (B, N, N)) with N = W*H.
    """
    B, C, W, H = x_nchw.shape
    N = W * H
    Ch = C // 2

    # Lane-dense padding of the channel dims.
    Cp = _round_up(C, 128)
    Chp = _round_up(Ch, 128)
    F = 2 * Chp + Cp

    TQ = _choose_tq(N, Cp, Chp)
    nq = N // TQ

    # (B, C, W, H) -> (B, N, Cp): flatten spatial, channels-last, zero-pad channels.
    x_bnc = x_nchw.reshape(B, C, N).transpose(0, 2, 1).astype(jnp.float32)
    if Cp != C:
        x_bnc = jnp.pad(x_bnc, ((0, 0), (0, 0), (0, Cp - C)))

    def _pad2(w, rows, cols):
        return jnp.pad(w.astype(jnp.float32),
                       ((0, rows - w.shape[0]), (0, cols - w.shape[1])))

    # Fused, pre-transposed, zero-padded weight [Wq^T | Wk^T | Wv^T] and bias.
    w_qkv = jnp.concatenate(
        [_pad2(wq.T, Cp, Chp), _pad2(wk.T, Cp, Chp), _pad2(wv.T, Cp, Cp)], axis=1)
    b_qkv = jnp.concatenate(
        [jnp.pad(bq.astype(jnp.float32), (0, Chp - Ch)),
         jnp.pad(bk.astype(jnp.float32), (0, Chp - Ch)),
         jnp.pad(bv.astype(jnp.float32), (0, Cp - C))]).reshape(1, F)
    gamma2 = gamma.reshape(1, 1).astype(jnp.float32)

    # Explicit VMEM limit (default scoped limit is too small for big tiles; cap at the
    # smallest physical VMEM, v7x's 64 MiB).
    est_bytes = 4 * (2 * N * Cp + N * F + 8 * TQ * N + 2 * TQ * Cp + 2 * Cp * F + 4 * F)
    vmem_limit = max(32 * 1024 * 1024, min(2 * est_bytes, 64 * 1024 * 1024))

    kernel = functools.partial(_sagan_attn_kernel, tq=TQ, chp=Chp, cp=Cp)

    out_bnc, attn = pl.pallas_call(
        kernel,
        out_shape=(
            jax.ShapeDtypeStruct((B, N, Cp), jnp.float32),
            jax.ShapeDtypeStruct((B, N, N), jnp.float32),
        ),
        grid=(B, nq),
        in_specs=[
            pl.BlockSpec((1, N, Cp), lambda b, qi: (b, 0, 0)),       # x (full N per batch)
            pl.BlockSpec((Cp, F), lambda b, qi: (0, 0)),             # fused W_qkv^T
            pl.BlockSpec((1, F), lambda b, qi: (0, 0)),              # fused bias
            pl.BlockSpec(memory_space=pltpu.MemorySpace.SMEM),       # gamma scalar
        ],
        out_specs=(
            pl.BlockSpec((1, TQ, Cp), lambda b, qi: (b, qi, 0)),
            pl.BlockSpec((1, TQ, N), lambda b, qi: (b, qi, 0)),
        ),
        scratch_shapes=[pltpu.VMEM((N, F), jnp.float32)],            # cached q|k|v per batch
        compiler_params=pltpu.CompilerParams(
            dimension_semantics=("parallel", "arbitrary"),
            vmem_limit_bytes=vmem_limit),
    )(x_bnc, w_qkv, b_qkv, gamma2)

    # (B, N, Cp) -> strip channel pad -> (B, C, W, H)
    out_nchw = out_bnc[:, :, :C].transpose(0, 2, 1).reshape(B, C, W, H)
    return out_nchw, attn


def _reference(x_nchw, wq, bq, wk, bk, wv, bv, gamma):
    """Pure-JAX replica of the PyTorch forward, for verification."""
    B, C, W, H = x_nchw.shape
    N = W * H
    xf = x_nchw.reshape(B, C, N)
    q = jnp.einsum('oc,bcn->bon', wq, xf) + bq[None, :, None]   # (B, C//2, N)
    k = jnp.einsum('oc,bcn->bon', wk, xf) + bk[None, :, None]   # (B, C//2, N)
    v = jnp.einsum('oc,bcn->bon', wv, xf) + bv[None, :, None]   # (B, C, N)
    dot = jnp.einsum('bcn,bcm->bnm', q, k)                      # query^T @ key
    attn = jax.nn.softmax(dot, axis=-1)                         # (B, N, N)
    out = jnp.einsum('bcm,bnm->bcn', v, attn)                   # value @ attn^T
    out = out.reshape(B, C, W, H)
    out = gamma[0] * out + x_nchw
    return out, attn


if __name__ == "__main__":
    B, C, W, H = 2, 4, 16, 16
    Ch = C // 2

    key = jax.random.PRNGKey(0)
    kx, kwq, kbq, kwk, kbk, kwv, kbv = jax.random.split(key, 7)

    x = jax.random.normal(kx, (B, C, W, H), dtype=jnp.float32)
    wq = jax.random.normal(kwq, (Ch, C), dtype=jnp.float32) * 0.1
    bq = jax.random.normal(kbq, (Ch,), dtype=jnp.float32) * 0.1
    wk = jax.random.normal(kwk, (Ch, C), dtype=jnp.float32) * 0.1
    bk = jax.random.normal(kbk, (Ch,), dtype=jnp.float32) * 0.1
    wv = jax.random.normal(kwv, (C, C), dtype=jnp.float32) * 0.1
    bv = jax.random.normal(kbv, (C,), dtype=jnp.float32) * 0.1
    # PyTorch initializes gamma to 0 (output == input); use a nonzero deterministic
    # value here so the attention path is actually exercised/verified.
    gamma = jnp.array([0.5], dtype=jnp.float32)

    out, attn = sagan_self_attention(x, wq, bq, wk, bk, wv, bv, gamma)
    out = jax.block_until_ready(out)
    attn = jax.block_until_ready(attn)

    ref_out, ref_attn = _reference(x, wq, bq, wk, bk, wv, bv, gamma)

    assert out.shape == (B, C, W, H)
    assert attn.shape == (B, W * H, W * H)
    # Tolerance slightly looser than 1e-5 because softmax normalisation uses the EUP
    # approximate reciprocal (pl.reciprocal(approx=True)); everything else is f32-exact.
    np.testing.assert_allclose(np.asarray(out), np.asarray(ref_out), rtol=2e-3, atol=2e-3)
    np.testing.assert_allclose(np.asarray(attn), np.asarray(ref_attn), rtol=2e-3, atol=2e-3)

    print("KERNEL_OK")
</pallas_src>

<mosaic_0001>
module attributes {stable_mosaic.version = 11 : i64} {
  func.func @_sagan_attn_kernel(%arg0: i32, %arg1: i32, %arg2: memref<1x256x128xf32, #tpu.memory_space<vmem>>, %arg3: memref<128x384xf32, #tpu.memory_space<vmem>>, %arg4: memref<1x384xf32, #tpu.memory_space<vmem>>, %arg5: memref<1x1xf32, #tpu.memory_space<smem>>, %arg6: memref<1x128x128xf32, #tpu.memory_space<vmem>>, %arg7: memref<1x128x256xf32, #tpu.memory_space<vmem>>, %arg8: memref<256x384xf32, #tpu.memory_space<vmem>>) attributes {dimension_semantics = [#tpu.dimension_semantics<parallel>, #tpu.dimension_semantics<arbitrary>], iteration_bounds = array<i64: 2, 2>, scalar_prefetch = 0 : i64, scratch_operands = 1 : i64, tpu.core_type = #tpu.core_type<tc>, window_params = [{transform_indices = @transform_0, window_bounds = array<i64: 1, 256, 128>}, {pipeline_mode = #tpu.pipeline_mode<synchronous>, transform_indices = @transform_1, window_bounds = array<i64: 128, 384>}, {pipeline_mode = #tpu.pipeline_mode<synchronous>, transform_indices = @transform_2, window_bounds = array<i64: 1, 384>}, {transform_indices = @transform_3, window_bounds = array<i64: 1, 1>}, {transform_indices = @transform_4, window_bounds = array<i64: 1, 128, 128>}, {transform_indices = @transform_5, window_bounds = array<i64: 1, 128, 256>}]} {
    %c0_i32 = arith.constant 0 : i32
    %0 = arith.cmpi eq, %arg1, %c0_i32 : i32
    %1 = arith.extui %0 : i1 to i32
    %c0_i32_0 = arith.constant 0 : i32
    %2 = arith.cmpi ne, %1, %c0_i32_0 : i32
    scf.if %2 {
      %c0_16 = arith.constant 0 : index
      %c0_17 = arith.constant 0 : index
      %c0_18 = arith.constant 0 : index
      %34 = vector.load %arg2[%c0_16, %c0_17, %c0_18] : memref<1x256x128xf32, #tpu.memory_space<vmem>>, vector<1x256x128xf32>
      %35 = vector.shape_cast %34 : vector<1x256x128xf32> to vector<256x128xf32>
      %c0_19 = arith.constant 0 : index
      %c0_20 = arith.constant 0 : index
      %36 = vector.load %arg3[%c0_19, %c0_20] : memref<128x384xf32, #tpu.memory_space<vmem>>, vector<128x384xf32>
      %cst_21 = arith.constant dense<0.000000e+00> : vector<256x384xf32>
      %37 = tpu.matmul %35, %36, %cst_21 {dimension_numbers = #tpu.dot_dimension_numbers<[1], [0], [0], [1], [0, 0, 1, 1], [], []>} : vector<256x128xf32>, vector<128x384xf32>, vector<256x384xf32> -> vector<256x384xf32>
      %c0_22 = arith.constant 0 : index
      %c0_23 = arith.constant 0 : index
      %38 = vector.load %arg4[%c0_22, %c0_23] : memref<1x384xf32, #tpu.memory_space<vmem>>, vector<1x384xf32>
      %39 = vector.broadcast %38 : vector<1x384xf32> to vector<256x384xf32>
      %40 = arith.addf %37, %39 : vector<256x384xf32>
      %c0_24 = arith.constant 0 : index
      %c0_25 = arith.constant 0 : index
      %41 = vector.load %arg8[%c0_24, %c0_25] : memref<256x384xf32, #tpu.memory_space<vmem>>, vector<256x384xf32>
      tpu.vector_store %arg8[%c0_24, %c0_25], %40 {strides = array<i32>} : memref<256x384xf32, #tpu.memory_space<vmem>>, vector<256x384xf32>,
    } else {
    }
    %c128_i32 = arith.constant 128 : i32
    %3 = arith.muli %arg1, %c128_i32 : i32
    %4 = tpu.assume_multiple %3, 128 : i32
    %5 = arith.index_cast %4 : i32 to index
    %c0 = arith.constant 0 : index
    %6 = vector.load %arg8[%5, %c0] : memref<256x384xf32, #tpu.memory_space<vmem>>, vector<128x128xf32>
    %c0_1 = arith.constant 0 : index
    %c128 = arith.constant 128 : index
    %7 = vector.load %arg8[%c0_1, %c128] : memref<256x384xf32, #tpu.memory_space<vmem>>, vector<256x128xf32>
    %c0_2 = arith.constant 0 : index
    %c256 = arith.constant 256 : index
    %8 = vector.load %arg8[%c0_2, %c256] : memref<256x384xf32, #tpu.memory_space<vmem>>, vector<256x128xf32>
    %cst = arith.constant dense<0.000000e+00> : vector<128x256xf32>
    %9 = tpu.matmul %6, %7, %cst {dimension_numbers = #tpu.dot_dimension_numbers<[1], [1], [0], [0], [0, 0, 1, 0], [], []>} : vector<128x128xf32>, vector<256x128xf32>, vector<128x256xf32> -> vector<128x256xf32>
    %cst_3 = arith.constant dense<0xFF800000> : vector<128xf32>
    %10 = vector.multi_reduction <maximumf>, %9, %cst_3 [1] : vector<128x256xf32> to vector<128xf32>
    %11 = vector.shape_cast %10 : vector<128xf32> to vector<128x1xf32>
    %12 = vector.broadcast %11 : vector<128x1xf32> to vector<128x256xf32>
    %13 = arith.subf %9, %12 : vector<128x256xf32>
    %14 = math.exp %13 : vector<128x256xf32>
    %cst_4 = arith.constant dense<0.000000e+00> : vector<128xf32>
    %15 = vector.multi_reduction <add>, %14, %cst_4 [1] : vector<128x256xf32> to vector<128xf32>
    %16 = vector.shape_cast %15 : vector<128xf32> to vector<128x1xf32>
    %17 = tpu.reciprocal %16 {approx = true} : vector<128x1xf32> -> vector<128x1xf32>
    %18 = vector.broadcast %17 : vector<128x1xf32> to vector<128x256xf32>
    %19 = arith.mulf %14, %18 : vector<128x256xf32>
    %cst_5 = arith.constant dense<0.000000e+00> : vector<128x128xf32>
    %20 = tpu.matmul %19, %8, %cst_5 {dimension_numbers = #tpu.dot_dimension_numbers<[1], [0], [0], [1], [0, 0, 1, 1], [], []>} : vector<128x256xf32>, vector<256x128xf32>, vector<128x128xf32> -> vector<128x128xf32>
    %c0_6 = arith.constant 0 : index
    %21 = arith.index_cast %4 : i32 to index
    %c0_7 = arith.constant 0 : index
    %22 = vector.load %arg2[%c0_6, %21, %c0_7] : memref<1x256x128xf32, #tpu.memory_space<vmem>>, vector<1x128x128xf32>
    %23 = vector.shape_cast %22 : vector<1x128x128xf32> to vector<128x128xf32>
    %c0_8 = arith.constant 0 : index
    %c0_9 = arith.constant 0 : index
    %24 = memref.load %arg5[%c0_8, %c0_9] : memref<1x1xf32, #tpu.memory_space<smem>>
    %25 = vector.broadcast %24 : f32 to vector<128x128xf32>
    %26 = arith.mulf %25, %20 : vector<128x128xf32>
    %27 = arith.addf %26, %23 : vector<128x128xf32>
    %c0_10 = arith.constant 0 : index
    %c0_11 = arith.constant 0 : index
    %c0_12 = arith.constant 0 : index
    %28 = vector.load %arg6[%c0_10, %c0_11, %c0_12] : memref<1x128x128xf32, #tpu.memory_space<vmem>>, vector<1x128x128xf32>
    %29 = vector.shape_cast %28 : vector<1x128x128xf32> to vector<128x128xf32>
    %30 = vector.shape_cast %27 : vector<128x128xf32> to vector<1x128x128xf32>
    tpu.vector_store %arg6[%c0_10, %c0_11, %c0_12], %30 {strides = array<i32>} : memref<1x128x128xf32, #tpu.memory_space<vmem>>, vector<1x128x128xf32>,
    %c0_13 = arith.constant 0 : index
    %c0_14 = arith.constant 0 : index
    %c0_15 = arith.constant 0 : index
    %31 = vector.load %arg7[%c0_13, %c0_14, %c0_15] : memref<1x128x256xf32, #tpu.memory_space<vmem>>, vector<1x128x256xf32>
    %32 = vector.shape_cast %31 : vector<1x128x256xf32> to vector<128x256xf32>
    %33 = vector.shape_cast %19 : vector<128x256xf32> to vector<1x128x256xf32>
    tpu.vector_store %arg7[%c0_13, %c0_14, %c0_15], %33 {strides = array<i32>} : memref<1x128x256xf32, #tpu.memory_space<vmem>>, vector<1x128x256xf32>,
    return
  }
  func.func @transform_0(%arg0: i32, %arg1: i32) -> (i32, i32, i32) {
    %c0_i32 = arith.constant 0 : i32
    %c0_i32_0 = arith.constant 0 : i32
    %c0_i32_1 = arith.constant 0 : i32
    return %arg0, %c0_i32, %c0_i32_0 : i32, i32, i32
  }
  func.func @transform_1(%arg0: i32, %arg1: i32) -> (i32, i32) {
    %c0_i32 = arith.constant 0 : i32
    %c0_i32_0 = arith.constant 0 : i32
    %c0_i32_1 = arith.constant 0 : i32
    return %c0_i32, %c0_i32_0 : i32, i32
  }
  func.func @transform_2(%arg0: i32, %arg1: i32) -> (i32, i32) {
    %c0_i32 = arith.constant 0 : i32
    %c0_i32_0 = arith.constant 0 : i32
    %c0_i32_1 = arith.constant 0 : i32
    return %c0_i32, %c0_i32_0 : i32, i32
  }
  func.func @transform_3(%arg0: i32, %arg1: i32) -> (i32, i32) {
    %c0_i32 = arith.constant 0 : i32
    %c0_i32_0 = arith.constant 0 : i32
    %c0_i32_1 = arith.constant 0 : i32
    return %c0_i32, %c0_i32_0 : i32, i32
  }
  func.func @transform_4(%arg0: i32, %arg1: i32) -> (i32, i32, i32) {
    %c0_i32 = arith.constant 0 : i32
    %c0_i32_0 = arith.constant 0 : i32
    return %arg0, %arg1, %c0_i32 : i32, i32, i32
  }
  func.func @transform_5(%arg0: i32, %arg1: i32) -> (i32, i32, i32) {
    %c0_i32 = arith.constant 0 : i32
    %c0_i32_0 = arith.constant 0 : i32
    return %arg0, %arg1, %c0_i32 : i32, i32, i32
  }
}

</mosaic_0001>

<bundles_post_ra>
// kernel: tpu_custom_call.1
= control target key start
LH: loop header
LB: loop body
LE: loop exit
PB: predicated region body
PF: predicated region fallthrough
CT: control target
= control target key end

     0   :  { %s3704_s0 = inlined_call_operand.hbm [shape: f32[2,256,128], index: 0, kind: input, shape index: {}]   ;;  %s3705_s1 = inlined_call_operand.hbm [shape: f32[128,384], index: 1, kind: input, shape index: {}]   ;;  %s3706_s2 = inlined_call_operand.vmem [shape: f32[1,384], index: 2, kind: input, shape index: {}]   ;;  %s3707_s3 = inlined_call_operand.<no memory space> [shape: f32[1,1], index: 3, kind: input, shape index: {}]   ;;  %s3708_s4 = inlined_call_operand.hbm [shape: f32[2,256,128], index: 4, kind: output, shape index: {0}]   ;;  %s3709_s5 = inlined_call_operand.hbm [shape: f32[2,256,256], index: 5, kind: output, shape index: {1}]  }
   0x1   :  { %3721 = sst [smem:[#allocation21_spill]] %s3705_s1 }
   0x2   :  { %3722 = sst [smem:[#allocation22_spill]] %s3708_s4 }
   0x3   :  { %11 = sst [smem:[#allocation3]] %s3707_s3 }
   0x4   :  { %12 = vsyncpa [#allocation5], 0 }
   0x5   :  { %14 = vsyncpa [#allocation5 + $0x1], 0 }
   0x6   :  { %15 = vsyncpa [#allocation8], 0 }
   0x7   :  { %16 = vsyncpa [#allocation6], 0 }
   0x8   :  { %18 = vsyncpa [#allocation6 + $0x1], 0 }
   0x9   :  { %19 = vsyncpa [#allocation11], 0 }
   0xa   :  { %21 = vsyncpa [#allocation11 + $0x1], 0  ;;  %s2807_s20 = smov 0   ;;  %s2809_s21 = smov 0  }
   0xb   :  { %s2811_s22 = smov 0   ;;  %s2813_s23 = smov 0  }
   0xc   :  { %s2815_s24 = smov 0   ;;  %s2817_s25 = smov 0  }
   0xd   :  { %s2819_s3 = smov 0   ;;  %s2821_s26 = smov 0  }
   0xe   :  { %s2823_s27 = smov 0   ;;  %s2825_s28 = smov 0  }
   0xf   :  { %s2827_s29 = smov 0  }
  0x10 LB: > { %3723 = sst [smem:[#allocation16_spill]] %s2719_s20  ;;  %s1874_s30 = sadd.s32 4294967295, %s2759_s29   ;;  %s2759_s29 = sphi %s2827_s29, %s27_s29   ;;  %s2755_s28 = sphi %s2825_s28, %s3757_s28   ;;  %s2751_s27 = sphi %s2823_s27, %s3748_s27   ;;  %s2747_s26 = sphi %s2821_s26, %s3756_s26   ;;  %s2743_s3 = sphi %s2819_s3, %s3747_s3   ;;  %s2739_s25 = sphi %s2817_s25, %s3755_s25   ;;  %s2735_s24 = sphi %s2815_s24, %s3754_s24   ;;  %s2731_s23 = sphi %s2813_s23, %s3753_s23   ;;  %s2727_s22 = sphi %s2811_s22, %s3752_s22   ;;  %s2723_s21 = sphi %s2809_s21, %s3751_s21   ;;  %s2719_s20 = sphi %s2807_s20, %s3750_s20  }
  0x11   : > { %3724 = sst [smem:[#allocation17_spill]] %s2751_s27  ;;  %s1875_s6 = sadd.s32 4294967294, %s2759_s29  }
  0x12   : > { %p59_p0 = scmp.ne.s32.totalorder %s2735_s24, %s2731_s23  ;;  %p2863_p1 = scmp.eq.s32.totalorder %s1874_s30, 0 }
  0x13   : > { %p147_p2 = scmp.ne.s32.totalorder %s2727_s22, %s2723_s21  ;;  %p148_p4 = scmp.eq.s32.totalorder %s1874_s30, 3 }
  0x14   : > { %s3725_s7 = scalar_select %p2863_p1, 1, 0 }
  0x15   : > { %p2872_p3 = por %p2863_p1, %p59_p0  ;;  %p153_p5 = scmp.ne.s32.totalorder %s2723_s21, %s2719_s20 }
  0x16   : > { %p154_p6 = scmp.eq.s32.totalorder %s1875_s6, 3  ;;  %p2878_p7 = por %p148_p4, %p147_p2 }
  0x17   : > { %s3726_s9 = scalar_select %p2872_p3, 1, 0 }
  0x18   : > { %s3727_s10 = scalar_select %p2878_p7, 1, 0 }
  0x19   : > { %p1876_p8 = scmp.ge.s32.totalorder %s2759_s29, 1  ;;  %p2883_p9 = por %p154_p6, %p153_p5 }
  0x1a   : > { %p189_p10 = scmp.lt.s32.totalorder %s2759_s29, 5  ;;  %s2761_s13 = smov [#allocation7]  }
  0x1b   : > { %s3728_s11 = scalar_select %p2883_p9, 1, 0 }
  0x1c   : > { %p2888_p11 = pnand %p1876_p8, %p189_p10  ;;  %s201_s14 = sshll.u32 %s2761_s13, 4  ;;  %s202_s14 = int_to_ptr.vmem [resolvable:$true] %s201_s14 }
  0x1d   : > { %3729 = sst [smem:[#allocation18_spill]] %s3728_s11  ;;  %s3732_s1 = sld [smem:[#allocation21_spill]] }
  0x1e   : > { %s3730_s12 = scalar_select %p2888_p11, 1, 0 }
  0x1f   : > { %p2330_p12 = pneg %p2888_p11 }
  0x21   : > { %p2896_p13 = pnand %p2330_p12, %p2863_p1 }
  0x23   : > { %s2543_s18 = scalar_lea.hbm %s3732_s1, 6144  ;;  %p2545_p2 = pneg %p2896_p13 }
  0x24   : > { %p2544_p0 = scmp.ne.s32.totalorder %s3732_s1, %s2543_s18  ;;  %p2550_p6 = scmp.lt.u32.totalorder %s2543_s18, %s3732_s1 }
  0x26   : > { %p2546_p4 = pnand %p2545_p2, %p2544_p0 }
  0x28   : > { %p2547_p5 = pneg %p2546_p4 }
  0x2a   : > { %p2552_p8 = pnand %p2550_p6, %p2547_p5 }
  0x2c   : > { %2555 = shalt.err (!%p2552_p8)
}
  0x2d   : > { %s2556_s13 = scalar_lea.vmem %s202_s14, 6144  ;;  %p2564_p7 = scmp.lt.s32.totalorder %s202_s14, %s202_s14 }
  0x2e   : > { %p2557_p10 = scmp.ne.s32.totalorder %s202_s14, %s2556_s13  ;;  %p2565_p1 = scmp.lt.s32.totalorder %s2556_s13, %s2556_s13 }
  0x30   : > { %p2559_p12 = pnand %p2557_p10, %p2545_p2  ;;  %p2566_p3 = por %p2565_p1, %p2564_p7 }
  0x32   : > { %p2560_p9 = pneg %p2559_p12 }
  0x34   : > { %p2567_p11 = pnand %p2566_p3, %p2560_p9 }
  0x36   : > { %2570 = shalt.err (!%p2567_p11)
}
  0x37   : > { %s2762_s16 = smov 384   ;;  %s2763_s17 = smov 24  }
  0x38   : > { %2333 = dma.hbm_to_vmem [thread:$0]  (!%p2896_p13), %s3732_s1, 6144, %s202_s14, [#allocation8], %s2762_s16, %s2762_s16, %s2763_s17  }
  0x39   : > { %s36_s23 = sadd.s32 1, %s2751_s27  ;;  %s39_s30 = sadd.s32 1, %s2755_s28 }
  0x3a   : > { %p37_p1 = scmp.ge.s32.totalorder %s36_s23, 2  ;;  %s46_s6 = sadd.s32 1, %s2739_s25 }
  0x3b   : > { %p53_p3 = scmp.ne.s32.totalorder %s2739_s25, %s2735_s24  ;;  %p54_p7 = scmp.eq.s32.totalorder %s2759_s29, 0 }
  0x3c   : > { %s3759_s23 = smov (%p37_p1, %s36_s23), 0  ;;  %s3761_s30 = smov (!%p37_p1, %s39_s30), %s2755_s28 }
  0x3d   : > { %3733 = sst [smem:[#allocation19_spill]] %s3759_s23  ;;  %s133_s15 = ssub.s32 %s2751_s27, %s3759_s23 }
  0x3e   : > { %p41_p9 = scmp.ge.s32.totalorder %s3761_s30, 2  ;;  %p2346_p11 = scmp.lt.s32.totalorder %s2759_s29, 4 }
  0x3f   : > { %p2928_p13 = por %p54_p7, %p53_p3  ;;  %s221_s13 = sand.u32 1, %s2739_s25  }
  0x40   : > { %s3763_s30 = smov (%p41_p9, %s3761_s30), 0  ;;  %s1879_s16 = sshll.u32 %s221_s13, 8 }
  0x41   : > { %3735 = sst [smem:[#allocation20_spill]] %s3763_s30  ;;  %s43_s17 = ssub.s32 %s2755_s28, %s3763_s30 }
  0x42   : > { %p44_p0 = scmp.eq.s32.totalorder %s43_s17, 0  ;;  %s134_s18 = sor.u32 %s133_s15, %s43_s17 }
  0x43   : > { %p135_p2 = scmp.eq.s32.totalorder %s134_s18, 0  ;;  %s1901_s19 = sshll.u32 %s2755_s28, 12 }
  0x44   : > { %s2939_s8 = scalar_select %p44_p0, %s2739_s25, %s46_s6  }
  0x45   : > { %s3736_s1 = sadd.s32 1, %s2727_s22  ;;  %s2949_s20 = scalar_lea.hbm %s3704_s0, %s1901_s19 }
  0x46   : > { %s2944_s23 = scalar_select %p135_p2, %s2727_s22, %s3736_s1  }
  0x47   : > { %s225_s4 = scalar_lea.vmem [#allocation4], %s1879_s16  ;;  %p2957_p4 = pnand %p2346_p11, %p2928_p13 }
  0x48   : > { %s232_s30 = sshll.u32 %s225_s4, 4  ;;  %s2961_s1 = scalar_lea.sflag [#allocation5], %s221_s13  ;;  %s2951_s30 = int_to_ptr.vmem [resolvable:$true] %s232_s30 }
  0x49   : > { %s2571_s27 = scalar_lea.hbm %s2949_s20, 4096  ;;  %p2573_p6 = pneg %p2957_p4 }
  0x4a   : > { %p2572_p5 = scmp.ne.s32.totalorder %s2949_s20, %s2571_s27  ;;  %s2576_s15 = scalar_lea.hbm %s3704_s0, 8192 }
  0x4b   : > { %p2577_p12 = scmp.lt.u32.totalorder %s2949_s20, %s3704_s0  ;;  %p2578_p1 = scmp.lt.u32.totalorder %s2576_s15, %s2571_s27 }
  0x4c   : > { %p2574_p8 = pnand %p2573_p6, %p2572_p5  ;;  %p2580_p7 = scmp.lt.u32.totalorder %s2571_s27, %s2949_s20 }
  0x4d   : > { %p2579_p3 = por %p2578_p1, %p2577_p12 }
  0x4e   : > { %p2575_p10 = pneg %p2574_p8 }
  0x4f   : > { %p2581_p9 = por %p2580_p7, %p2579_p3 }
  0x51   : > { %p2582_p11 = pnand %p2581_p9, %p2575_p10 }
  0x53   : > { %2585 = shalt.err (!%p2582_p11)
}
  0x54   : > { %s2586_s13 = scalar_lea.vmem %s2951_s30, 4096  ;;  %s2764_s17 = smov [#allocation4]  }
  0x55   : > { %p2587_p13 = scmp.ne.s32.totalorder %s2951_s30, %s2586_s13  ;;  %s2591_s18 = sshll.u32 %s2764_s17, 4  ;;  %s2592_s18 = int_to_ptr.vmem [resolvable:$false] %s2591_s18 }
  0x56   : > { %s2593_s19 = scalar_lea.vmem %s2592_s18, 8192  ;;  %p2594_p5 = scmp.lt.s32.totalorder %s2951_s30, %s2592_s18 }
  0x57   : > { %p2589_p0 = pnand %p2587_p13, %p2573_p6  ;;  %p2595_p8 = scmp.lt.s32.totalorder %s2593_s19, %s2586_s13 }
  0x59   : > { %p2590_p2 = pneg %p2589_p0  ;;  %p2596_p12 = por %p2595_p8, %p2594_p5 }
  0x5b   : > { %p2597_p1 = pnand %p2596_p12, %p2590_p2 }
  0x5d   : > { %2600 = shalt.err (!%p2597_p1)
}
  0x5e   : > { %s2765_s27 = smov 128   ;;  %s2766_s4 = smov 8  }
  0x5f   : > { %2337 = dma.hbm_to_vmem [thread:$0]  (!%p2957_p4), %s2949_s20, 4096, %s2951_s30, %s2961_s1, %s2765_s27, %s2765_s27, %s2766_s4  }
  0x60   : > { %p3738_p6 = scmp.ne.s32.totalorder %s3730_s12, 0 }
  0x61   : > { %s246_s11 = sand.u32 (!%p3738_p6), 1, %s2735_s24   ;;  %p3739_p10 = scmp.ne.s32.totalorder (!%p3738_p6), %s3726_s9, 0 }
  0x62   : > { %244 = sbr.rel (%p3738_p6) target bundleno = 1345 (0x541), region = 36  ;;  %s1883_s15 = sshll.u32 (!%p3738_p6), %s246_s11, 8 }
  0x63   : > { %s247_s14 = scalar_lea.sflag (!%p3738_p6), [#allocation5], %s246_s11  ;;  %s2992_s16 = scalar_lea.vmem (!%p3738_p6), [#allocation4], %s1883_s15 }
  0x69   : > { %2702 = dma.done.wait (%p3739_p10), %s247_s14, 4096  }
  0x6a   : > { %2704 = vsyncadd (%p3739_p10), %s247_s14, 4294963200  ;;  %p3740_p3 = scmp.ne.s32.totalorder %s3725_s7, 0 }
  0x6c   : > { %2706 = dma.done.wait (%p3740_p3), [#allocation8], 6144  }
  0x6d   : > { %2708 = vsyncadd (%p3740_p3), [#allocation8], 4294961152  ;;  %s3003_s20 = sand.u32 1, %s2723_s21   ;;  %p1887_p4 = scmp.ne.s32.totalorder %s2743_s3, 0 }
  0x6e   : > { %s1885_s12 = sshll.u32 %s3003_s20, 7  ;;  %s1886_s30 = sshll.u32 %s3003_s20, 8  ;;  %v325_v0 = vld [vmem:[#allocation7 + $0x8] sm:$0xff] (!%p1887_p4)  ;;  %v328_v1 = vld [vmem:[#allocation7 + $0x20] sm:$0xff] (!%p1887_p4)  ;;  %v327_v4 = vld [vmem:[#allocation7 + $0x18] sm:$0xff] (!%p1887_p4)  ;;  %v2767_v7 = vmov (!%p1887_p4), 0.0  }
  0x6f   : > { %s3007_s6 = scalar_lea.vmem [#allocation9], %s1885_s12  ;;  %s3009_s1 = scalar_lea.vmem [#allocation10], %s1886_s30  ;;  %v324_v2 = vld [vmem:[#allocation7] sm:$0xff] (!%p1887_p4)  ;;  %v2176_v3 = vpack.c.bf16 (!%p1887_p4), %v328_v1, %v325_v0  ;;  %v331_v5 = vld [vmem:[#allocation7 + $0x38] sm:$0xff] (!%p1887_p4)  ;;  %v334_v6 = vld [vmem:[#allocation7 + $0x50] sm:$0xff] (!%p1887_p4)  ;;  %453 = vmatprep.mubr.f32.mxu0 (!%p1887_p4), %v2767_v7  ;;  %597 = vmatprep.mubr.f32.mxu1 (!%p1887_p4), %v2767_v7 }
  0x70   : > { %291 = sbr.rel (%p1887_p4) target bundleno = 453 (0x1c5), region = 48  ;;  %v2178_v8 = vpack.c.bf16 (!%p1887_p4), %v327_v4, %v324_v2  ;;  %v2180_v9 = vpack.c.bf16 (!%p1887_p4), %v334_v6, %v331_v5  ;;  %v330_v10 = vld [vmem:[#allocation7 + $0x30] sm:$0xff] (!%p1887_p4)  ;;  %v333_v11 = vld [vmem:[#allocation7 + $0x48] sm:$0xff] (!%p1887_p4)  ;;  %v340_v13 = vld [vmem:[#allocation7 + $0x80] sm:$0xff] (!%p1887_p4) }
  0x71   : > { %v337_v12 = vld [vmem:[#allocation7 + $0x68] sm:$0xff] (!%p1887_p4)  ;;  %2177 = vmatprep.subr.bf16.mxu0 (!%p1887_p4), %v2176_v3  ;;  %2304 = vmatprep.subr.bf16.mxu1 (!%p1887_p4), %v2176_v3  ;;  %v2182_v14 = vpack.c.bf16 (!%p1887_p4), %v333_v11, %v330_v10  ;;  %v336_v16 = vld [vmem:[#allocation7 + $0x60] sm:$0xff] (!%p1887_p4)  ;;  %v339_v17 = vld [vmem:[#allocation7 + $0x78] sm:$0xff] (!%p1887_p4) }
  0x72   : > { %2179 = vmatpush1.bf16.msra.mxu0 (!%p1887_p4), %v2178_v8  ;;  %2312 = vmatpush1.bf16.msra.mxu1 (!%p1887_p4), %v2178_v8  ;;  %v2184_v15 = vpack.c.bf16 (!%p1887_p4), %v340_v13, %v337_v12  ;;  %v343_v18 = vld [vmem:[#allocation7 + $0x98] sm:$0xff] (!%p1887_p4)  ;;  %v346_v19 = vld [vmem:[#allocation7 + $0xb0] sm:$0xff] (!%p1887_p4)  ;;  %v2186_v20 = vpack.c.bf16 (!%p1887_p4), %v339_v17, %v336_v16  ;;  %v345_v23 = vld [vmem:[#allocation7 + $0xa8] sm:$0xff] (!%p1887_p4) }
  0x73   : > { %2181 = vmatprep.subr.bf16.mxu0 (!%p1887_p4), %v2180_v9  ;;  %2305 = vmatprep.subr.bf16.mxu1 (!%p1887_p4), %v2180_v9  ;;  %v2188_v21 = vpack.c.bf16 (!%p1887_p4), %v346_v19, %v343_v18  ;;  %v342_v22 = vld [vmem:[#allocation7 + $0x90] sm:$0xff] (!%p1887_p4)  ;;  %v349_v24 = vld [vmem:[#allocation7 + $0xc8] sm:$0xff] (!%p1887_p4)  ;;  %v352_v25 = vld [vmem:[#allocation7 + $0xe0] sm:$0xff] (!%p1887_p4) }
  0x74   : > { %v2190_v26 = vpack.c.bf16 (!%p1887_p4), %v345_v23, %v342_v22  ;;  %v2192_v27 = vpack.c.bf16 (!%p1887_p4), %v352_v25, %v349_v24  ;;  %v348_v28 = vld [vmem:[#allocation7 + $0xc0] sm:$0xff] (!%p1887_p4)  ;;  %v351_v29 = vld [vmem:[#allocation7 + $0xd8] sm:$0xff] (!%p1887_p4)  ;;  %v358_v31 = vld [vmem:[#allocation7 + $0x110] sm:$0xff] (!%p1887_p4) }
  0x75   : > { %v355_v30 = vld [vmem:[#allocation7 + $0xf8] sm:$0xff] (!%p1887_p4)  ;;  %v2194_v32 = vpack.c.bf16 (!%p1887_p4), %v351_v29, %v348_v28  ;;  %v354_v34 = vld [vmem:[#allocation7 + $0xf0] sm:$0xff] (!%p1887_p4)  ;;  %v357_v35 = vld [vmem:[#allocation7 + $0x108] sm:$0xff] (!%p1887_p4) }
  0x76   : > { %2183 = vmatpush1.bf16.msra.mxu0 (!%p1887_p4), %v2182_v14  ;;  %2313 = vmatpush1.bf16.msra.mxu1 (!%p1887_p4), %v2182_v14  ;;  %v2196_v33 = vpack.c.bf16 (!%p1887_p4), %v358_v31, %v355_v30  ;;  %v361_v36 = vld [vmem:[#allocation7 + $0x128] sm:$0xff] (!%p1887_p4)  ;;  %v364_v37 = vld [vmem:[#allocation7 + $0x140] sm:$0xff] (!%p1887_p4)  ;;  %v2198_v38 = vpack.c.bf16 (!%p1887_p4), %v357_v35, %v354_v34  ;;  %v363_v41 = vld [vmem:[#allocation7 + $0x138] sm:$0xff] (!%p1887_p4) }
  0x77   : > { %2185 = vmatprep.subr.bf16.mxu0 %v2184_v15  ;;  %2306 = vmatprep.subr.bf16.mxu1 %v2184_v15  ;;  %v2200_v39 = vpack.c.bf16 %v364_v37, %v361_v36  ;;  %v360_v40 = vld [vmem:[#allocation7 + $0x120] sm:$0xff]  ;;  %v367_v42 = vld [vmem:[#allocation7 + $0x158] sm:$0xff]  ;;  %v370_v43 = vld [vmem:[#allocation7 + $0x170] sm:$0xff] }
  0x78   : > { %v2202_v44 = vpack.c.bf16 %v363_v41, %v360_v40  ;;  %v2204_v45 = vpack.c.bf16 %v370_v43, %v367_v42  ;;  %v366_v46 = vld [vmem:[#allocation7 + $0x150] sm:$0xff]  ;;  %v369_v47 = vld [vmem:[#allocation7 + $0x168] sm:$0xff]  ;;  %v332_v52 = vld [vmem:[#allocation7 + $0x40] sm:$0xff]  ;;  %v374_v42 = vlaneseq }
  0x79   : > { %v326_v48 = vld [vmem:[#allocation7 + $0x10] sm:$0xff]  ;;  %v329_v49 = vld [vmem:[#allocation7 + $0x28] sm:$0xff]  ;;  %v2206_v50 = vpack.c.bf16 %v369_v47, %v366_v46  ;;  %v335_v53 = vld [vmem:[#allocation7 + $0x58] sm:$0xff] }
  0x7a   : > { %2187 = vmatpush1.bf16.msra.mxu0 %v2186_v20  ;;  %2314 = vmatpush1.bf16.msra.mxu1 %v2186_v20  ;;  %v2208_v51 = vpack.c.bf16 %v329_v49, %v326_v48  ;;  %v3015_v54 = vld [vmem:[%s2992_s16] sm:$0xff]  ;;  %v2212_v56 = vpack.c.bf16 %v335_v53, %v332_v52  ;;  %v338_v57 = vld [vmem:[#allocation7 + $0x70] sm:$0xff]  ;;  %v341_v58 = vld [vmem:[#allocation7 + $0x88] sm:$0xff]  ;;  %v3120_v43 = vshrl.u32 %v374_v42, 7 }
  0x7b   : > { %2189 = vmatprep.subr.bf16.mxu0 %v2188_v21  ;;  %2307 = vmatprep.subr.bf16.mxu1 %v2188_v21  ;;  %v3018_v55 = vld [vmem:[%s2992_s16 + $0xc0] sm:$0xff]  ;;  %v3024_v59 = vld [vmem:[%s2992_s16 + $0x8] sm:$0xff]  ;;  %v2216_v61 = vpack.c.bf16 %v341_v58, %v338_v57  ;;  %v347_v63 = vld [vmem:[#allocation7 + $0xb8] sm:$0xff] }
  0x7c   : > { %v3027_v60 = vld [vmem:[%s2992_s16 + $0xc8] sm:$0xff]  ;;  %v344_v62 = vld [vmem:[#allocation7 + $0xa0] sm:$0xff]  ;;  %v3034_v0 = vld [vmem:[%s2992_s16 + $0x10] sm:$0xff]  ;;  %v380_v46 = vsub.s32 1, %v3120_v43 }
  0x7d   : > { %v3037_v1 = vld [vmem:[%s2992_s16 + $0xd0] sm:$0xff]  ;;  %v2220_v2 = vpack.c.bf16 %v347_v63, %v344_v62  ;;  %v353_v4 = vld [vmem:[#allocation7 + $0xe8] sm:$0xff]  ;;  %v295_v5 = vld [vmem:[%s2992_s16 + $0x18] sm:$0xff] }
  0x7e   : > { %2191 = vmatpush1.bf16.msra.mxu0 %v2190_v26  ;;  %2315 = vmatpush1.bf16.msra.mxu1 %v2190_v26  ;;  %v350_v3 = vld [vmem:[#allocation7 + $0xd0] sm:$0xff]  ;;  %v3045_v6 = vld [vmem:[%s2992_s16 + $0xd8] sm:$0xff]  ;;  %v356_v9 = vld [vmem:[#allocation7 + $0x100] sm:$0xff] }
  0x7f   : > { %2193 = vmatprep.subr.bf16.mxu0 %v2192_v27  ;;  %2308 = vmatprep.subr.bf16.mxu1 %v2192_v27  ;;  %v2224_v8 = vpack.c.bf16 %v353_v4, %v350_v3  ;;  %v359_v10 = vld [vmem:[#allocation7 + $0x118] sm:$0xff]  ;;  %v296_v11 = vld [vmem:[%s2992_s16 + $0x20] sm:$0xff]  ;;  %v362_v14 = vld [vmem:[#allocation7 + $0x130] sm:$0xff] }
  0x80   : > { %v3052_v12 = vld [vmem:[%s2992_s16 + $0xe0] sm:$0xff]  ;;  %v2228_v13 = vpack.c.bf16 %v359_v10, %v356_v9  ;;  %v365_v15 = vld [vmem:[#allocation7 + $0x148] sm:$0xff]  ;;  %v371_v20 = vld [vmem:[#allocation7 + $0x178] sm:$0xff] }
  0x81   : > { %v297_v16 = vld [vmem:[%s2992_s16 + $0x28] sm:$0xff]  ;;  %v2232_v18 = vpack.c.bf16 %v365_v15, %v362_v14  ;;  %v368_v19 = vld [vmem:[#allocation7 + $0x160] sm:$0xff]  ;;  %v298_v21 = vld [vmem:[%s2992_s16 + $0x30] sm:$0xff] }
  0x82   : > { %2195 = vmatpush1.bf16.msra.mxu0 %v2194_v32  ;;  %2316 = vmatpush1.bf16.msra.mxu1 %v2194_v32  ;;  %v3059_v17 = vld [vmem:[%s2992_s16 + $0xe8] sm:$0xff]  ;;  %v3066_v22 = vld [vmem:[%s2992_s16 + $0xf0] sm:$0xff]  ;;  %v2236_v23 = vpack.c.bf16 %v371_v20, %v368_v19  ;;  %v299_v24 = vld [vmem:[%s2992_s16 + $0x38] sm:$0xff] }
  0x83   : > { %2197 = vmatprep.subr.bf16.mxu0 %v2196_v33  ;;  %2309 = vmatprep.subr.bf16.mxu1 %v2196_v33  ;;  %v3073_v25 = vld [vmem:[%s2992_s16 + $0xf8] sm:$0xff]  ;;  %v300_v26 = vld [vmem:[%s2992_s16 + $0x40] sm:$0xff]  ;;  %v301_v27 = vld [vmem:[%s2992_s16 + $0x48] sm:$0xff] }
  0x84   : > { %v302_v28 = vld [vmem:[%s2992_s16 + $0x50] sm:$0xff]  ;;  %v303_v29 = vld [vmem:[%s2992_s16 + $0x58] sm:$0xff]  ;;  %v304_v30 = vld [vmem:[%s2992_s16 + $0x60] sm:$0xff] }
  0x85   : > { %v305_v31 = vld [vmem:[%s2992_s16 + $0x68] sm:$0xff]  ;;  %v306_v32 = vld [vmem:[%s2992_s16 + $0x70] sm:$0xff]  ;;  %v307_v33 = vld [vmem:[%s2992_s16 + $0x78] sm:$0xff] }
  0x86   : > { %2199 = vmatpush1.bf16.msra.mxu0 %v2198_v38  ;;  %2317 = vmatpush1.bf16.msra.mxu1 %v2198_v38  ;;  %v308_v34 = vld [vmem:[%s2992_s16 + $0x80] sm:$0xff]  ;;  %v309_v35 = vld [vmem:[%s2992_s16 + $0x88] sm:$0xff]  ;;  %v310_v36 = vld [vmem:[%s2992_s16 + $0x90] sm:$0xff] }
  0x87   : > { %2201 = vmatprep.subr.bf16.mxu0 %v2200_v39  ;;  %2310 = vmatprep.subr.bf16.mxu1 %v2200_v39  ;;  %v311_v37 = vld [vmem:[%s2992_s16 + $0x98] sm:$0xff]  ;;  %v312_v38 = vld [vmem:[%s2992_s16 + $0xa0] sm:$0xff]  ;;  %v313_v39 = vld [vmem:[%s2992_s16 + $0xa8] sm:$0xff] }
  0x88   : > { %v314_v40 = vld [vmem:[%s2992_s16 + $0xb0] sm:$0xff]  ;;  %v315_v41 = vld [vmem:[%s2992_s16 + $0xb8] sm:$0xff] }
  0x8a   : > { %2203 = vmatpush1.bf16.msra.mxu0 %v2202_v44  ;;  %2318 = vmatpush1.bf16.msra.mxu1 %v2202_v44  ;;  %v376_v44 = vsub.s32 0, %v3120_v43 }
  0x8b   : > { %2205 = vmatprep.subr.bf16.mxu0 %v2204_v45  ;;  %2311 = vmatprep.subr.bf16.mxu1 %v2204_v45  ;;  %v3126_v45 = vld [vmem:[%s3706_s2] sm:$0x7] }
  0x8c   : > { %v3130_v47 = vrot.slane %v3126_v45, %v376_v44 }
  0x8e   : > { %2207 = vmatpush1.bf16.msra.mxu0 %v2206_v50  ;;  %2319 = vmatpush1.bf16.msra.mxu1 %v2206_v50 }
  0x8f   : > { %2209 = vmatprep.subr.bf16.mxu1 %v2208_v51 }
  0x91   : > { %454 = vmatmul.mubr.f32.vlgmr.msra.gmra.mrb[0].mxu0 %v3015_v54  ;;  %598 = vmatmul.mubr.f32.vlgmr.msra.gmra.mrb[0].mxu1 %v3018_v55 }
  0x92   : > { %2211 = vmatpush3.bf16.msra.mxu1 %v2208_v51  ;;  %459 = vmatprep.mubr.f32.mxu0 %v2767_v7 }
  0x93   : > { %603 = vmatprep.mubr.f32.mxu1 %v2767_v7  ;;  %2213 = vmatprep.subr.bf16.mxu1 %v2212_v56 }
  0x95   : > { %460 = vmatmul.mubr.f32.gmra.mrb[2].mxu0 %v3024_v59  ;;  %604 = vmatmul.mubr.f32.gmra.mrb[2].mxu1 %v3027_v60 }
  0x96   : > { %2215 = vmatpush3.bf16.msra.mxu1 %v2212_v56  ;;  %465 = vmatprep.mubr.f32.mxu0 %v2767_v7 }
  0x97   : > { %609 = vmatprep.mubr.f32.mxu1 %v2767_v7  ;;  %2217 = vmatprep.subr.bf16.mxu1 %v2216_v61 }
  0x99   : > { %466 = vmatmul.mubr.f32.gmra.mrb[4].mxu0 %v3034_v0  ;;  %610 = vmatmul.mubr.f32.gmra.mrb[4].mxu1 %v3037_v1 }
  0x9a   : > { %2219 = vmatpush3.bf16.msra.mxu1 %v2216_v61  ;;  %471 = vmatprep.mubr.f32.mxu0 %v2767_v7 }
  0x9b   : > { %615 = vmatprep.mubr.f32.mxu1 %v2767_v7  ;;  %2221 = vmatprep.subr.bf16.mxu1 %v2220_v2 }
  0x9d   : > { %472 = vmatmul.mubr.f32.gmra.mrb[6].mxu0 %v295_v5  ;;  %616 = vmatmul.mubr.f32.gmra.mrb[6].mxu1 %v3045_v6 }
  0x9e   : > { %2223 = vmatpush3.bf16.msra.mxu1 %v2220_v2  ;;  %477 = vmatprep.mubr.f32.mxu0 %v2767_v7 }
  0x9f   : > { %621 = vmatprep.mubr.f32.mxu1 %v2767_v7  ;;  %2225 = vmatprep.subr.bf16.mxu1 %v2224_v8 }
  0xa1   : > { %478 = vmatmul.mubr.f32.gmra.mrb[8].mxu0 %v296_v11  ;;  %622 = vmatmul.mubr.f32.gmra.mrb[8].mxu1 %v3052_v12 }
  0xa2   : > { %2227 = vmatpush3.bf16.msra.mxu1 %v2224_v8  ;;  %483 = vmatprep.mubr.f32.mxu0 %v2767_v7 }
  0xa3   : > { %627 = vmatprep.mubr.f32.mxu1 %v2767_v7  ;;  %2229 = vmatprep.subr.bf16.mxu1 %v2228_v13 }
  0xa5   : > { %484 = vmatmul.mubr.f32.gmra.mrb[10].mxu0 %v297_v16  ;;  %628 = vmatmul.mubr.f32.gmra.mrb[10].mxu1 %v3059_v17 }
  0xa6   : > { %2231 = vmatpush3.bf16.msra.mxu1 %v2228_v13  ;;  %489 = vmatprep.mubr.f32.mxu0 %v2767_v7 }
  0xa7   : > { %633 = vmatprep.mubr.f32.mxu1 %v2767_v7  ;;  %2233 = vmatprep.subr.bf16.mxu1 %v2232_v18 }
  0xa9   : > { %490 = vmatmul.mubr.f32.gmra.mrb[12].mxu0 %v298_v21  ;;  %634 = vmatmul.mubr.f32.gmra.mrb[12].mxu1 %v3066_v22 }
  0xaa   : > { %2235 = vmatpush3.bf16.msra.mxu1 %v2232_v18  ;;  %495 = vmatprep.mubr.f32.mxu0 %v2767_v7 }
  0xab   : > { %639 = vmatprep.mubr.f32.mxu1 %v2767_v7  ;;  %2237 = vmatprep.subr.bf16.mxu1 %v2236_v23 }
  0xad   : > { %496 = vmatmul.mubr.f32.gmra.mrb[14].mxu0 %v299_v24  ;;  %640 = vmatmul.mubr.f32.gmra.mrb[14].mxu1 %v3073_v25 }
  0xae   : > { %2239 = vmatpush3.bf16.msra.mxu1 %v2236_v23  ;;  %501 = vmatprep.mubr.f32.mxu0 %v2767_v7 }
  0xaf   : > { %2128 = vmatprep.mubr.f32.mxu1 %v3015_v54 }
  0xb1   : > { %502 = vmatmul.mubr.f32.gmra.mrb[16].mxu0 %v300_v26  ;;  %2129 = vmatmul.mubr.f32.vlgmr.msra.gmra.mrb[16].mxu1 %v3024_v59 }
  0xb2   : > { %507 = vmatprep.mubr.f32.mxu0 %v2767_v7  ;;  %2131 = vmatprep.mubr.f32.mxu1 %v3034_v0 }
  0xb5   : > { %508 = vmatmul.mubr.f32.gmra.mrb[18].mxu0 %v301_v27  ;;  %2132 = vmatmul.mubr.f32.gmra.mrb[18].mxu1 %v295_v5 }
  0xb6   : > { %513 = vmatprep.mubr.f32.mxu0 %v2767_v7  ;;  %2134 = vmatprep.mubr.f32.mxu1 %v296_v11 }
  0xb9   : > { %514 = vmatmul.mubr.f32.gmra.mrb[20].mxu0 %v302_v28  ;;  %2135 = vmatmul.mubr.f32.gmra.mrb[20].mxu1 %v297_v16 }
  0xba   : > { %519 = vmatprep.mubr.f32.mxu0 %v2767_v7  ;;  %2137 = vmatprep.mubr.f32.mxu1 %v298_v21 }
  0xbd   : > { %520 = vmatmul.mubr.f32.gmra.mrb[22].mxu0 %v303_v29  ;;  %2138 = vmatmul.mubr.f32.gmra.mrb[22].mxu1 %v299_v24 }
  0xbe   : > { %525 = vmatprep.mubr.f32.mxu0 %v2767_v7  ;;  %2140 = vmatprep.mubr.f32.mxu1 %v300_v26 }
  0xc1   : > { %526 = vmatmul.mubr.f32.gmra.mrb[24].mxu0 %v304_v30  ;;  %2141 = vmatmul.mubr.f32.gmra.mrb[24].mxu1 %v301_v27 }
  0xc2   : > { %531 = vmatprep.mubr.f32.mxu0 %v2767_v7  ;;  %2143 = vmatprep.mubr.f32.mxu1 %v302_v28 }
  0xc5   : > { %532 = vmatmul.mubr.f32.gmra.mrb[26].mxu0 %v305_v31  ;;  %2144 = vmatmul.mubr.f32.gmra.mrb[26].mxu1 %v303_v29 }
  0xc6   : > { %537 = vmatprep.mubr.f32.mxu0 %v2767_v7  ;;  %2146 = vmatprep.mubr.f32.mxu1 %v304_v30 }
  0xc9   : > { %538 = vmatmul.mubr.f32.gmra.mrb[28].mxu0 %v306_v32  ;;  %2147 = vmatmul.mubr.f32.gmra.mrb[28].mxu1 %v305_v31 }
  0xca   : > { %543 = vmatprep.mubr.f32.mxu0 %v2767_v7  ;;  %2149 = vmatprep.mubr.f32.mxu1 %v306_v32 }
  0xcd   : > { %544 = vmatmul.mubr.f32.gmra.mrb[30].mxu0 %v307_v33  ;;  %2150 = vmatmul.mubr.f32.gmra.mrb[30].mxu1 %v307_v33 }
  0xce   : > { %549 = vmatprep.mubr.f32.mxu0 %v2767_v7  ;;  %2152 = vmatprep.mubr.f32.mxu1 %v308_v34 }
  0xd1   : > { %550 = vmatmul.mubr.f32.gmra.mrb[32].mxu0 %v308_v34  ;;  %2153 = vmatmul.mubr.f32.gmra.mrb[32].mxu1 %v309_v35 }
  0xd2   : > { %555 = vmatprep.mubr.f32.mxu0 %v2767_v7  ;;  %2155 = vmatprep.mubr.f32.mxu1 %v310_v36 }
  0xd5   : > { %556 = vmatmul.mubr.f32.gmra.mrb[34].mxu0 %v309_v35  ;;  %2156 = vmatmul.mubr.f32.gmra.mrb[34].mxu1 %v311_v37 }
  0xd6   : > { %561 = vmatprep.mubr.f32.mxu0 %v2767_v7  ;;  %2158 = vmatprep.mubr.f32.mxu1 %v312_v38 }
  0xd9   : > { %562 = vmatmul.mubr.f32.gmra.mrb[36].mxu0 %v310_v36  ;;  %2159 = vmatmul.mubr.f32.gmra.mrb[36].mxu1 %v313_v39 }
  0xda   : > { %567 = vmatprep.mubr.f32.mxu0 %v2767_v7  ;;  %2161 = vmatprep.mubr.f32.mxu1 %v314_v40 }
  0xdd   : > { %568 = vmatmul.mubr.f32.gmra.mrb[38].mxu0 %v311_v37  ;;  %2162 = vmatmul.mubr.f32.gmra.mrb[38].mxu1 %v315_v41 }
  0xde   : > { %573 = vmatprep.mubr.f32.mxu0 %v2767_v7  ;;  %2164 = vmatprep.mubr.f32.mxu1 %v3018_v55 }
  0xe1   : > { %574 = vmatmul.mubr.f32.gmra.mrb[40].mxu0 %v312_v38  ;;  %2165 = vmatmul.mubr.f32.gmra.mrb[40].mxu1 %v3027_v60 }
  0xe2   : > { %579 = vmatprep.mubr.f32.mxu0 %v2767_v7  ;;  %2167 = vmatprep.mubr.f32.mxu1 %v3037_v1 }
  0xe5   : > { %580 = vmatmul.mubr.f32.gmra.mrb[42].mxu0 %v313_v39  ;;  %2168 = vmatmul.mubr.f32.gmra.mrb[42].mxu1 %v3045_v6  ;;  %v384_v39 = vsub.s32 2, %v3120_v43 }
  0xe6   : > { %585 = vmatprep.mubr.f32.mxu0 %v2767_v7  ;;  %2170 = vmatprep.mubr.f32.mxu1 %v3052_v12 }
  0xe9   : > { %586 = vmatmul.mubr.f32.gmra.mrb[44].mxu0 %v314_v40  ;;  %2171 = vmatmul.mubr.f32.gmra.mrb[44].mxu1 %v3059_v17 }
  0xea   : > { %591 = vmatprep.mubr.f32.mxu0 %v2767_v7  ;;  %2173 = vmatprep.mubr.f32.mxu1 %v3066_v22  ;;  %v3133_v7 = vrot.slane %v3126_v45, %v380_v46 }
  0xed   : > { %592 = vmatmul.mubr.f32.gmra.mrb[46].mxu0 %v315_v41  ;;  %2174 = vmatmul.mubr.f32.gmra.mrb[46].mxu1 %v3073_v25 }
 0x164   : > { %v455_v48 = vpop.f32.mrb[0].mxu0  ;;  %v599_v49 = vpop.f32.mrb[0].mxu1 }
 0x165   : > { %v456_v50 = vadd.f32 %v455_v48, %v3130_v47  ;;  %v600_v51 = vadd.f32 %v599_v49, %v3130_v47  ;;  %v457_v52 = vpop.f32.mrb[1].mxu0  ;;  %v601_v53 = vpop.f32.mrb[1].mxu1 }
 0x166   : > { %v458_v54 = vadd.f32 %v457_v52, %v3133_v7  ;;  %v602_v55 = vadd.f32 %v601_v53, %v3133_v7 }
 0x167   : > { %871 = vst [vmem:[#allocation2] sm:$0xff] %v456_v50  ;;  %943 = vst [vmem:[#allocation2 + $0x240] sm:$0xff] %v600_v51  ;;  %v3167_v51 = vrot.slane %v3126_v45, %v384_v39 }
 0x168   : > { %872 = vst [vmem:[#allocation2 + $0x8] sm:$0xff] %v458_v54  ;;  %944 = vst [vmem:[#allocation2 + $0x248] sm:$0xff] %v602_v55  ;;  %v461_v56 = vpop.f32.mrb[2].mxu0  ;;  %v605_v57 = vpop.f32.mrb[2].mxu1 }
 0x169   : > { %v462_v58 = vadd.f32 %v461_v56, %v3130_v47  ;;  %v606_v59 = vadd.f32 %v605_v57, %v3130_v47  ;;  %v463_v60 = vpop.f32.mrb[3].mxu0  ;;  %v607_v61 = vpop.f32.mrb[3].mxu1 }
 0x16a   : > { %v464_v62 = vadd.f32 %v463_v60, %v3133_v7  ;;  %v608_v63 = vadd.f32 %v607_v61, %v3133_v7 }
 0x16b   : > { %874 = vst [vmem:[#allocation2 + $0x18] sm:$0xff] %v462_v58  ;;  %946 = vst [vmem:[#allocation2 + $0x258] sm:$0xff] %v606_v59 }
 0x16c   : > { %875 = vst [vmem:[#allocation2 + $0x20] sm:$0xff] %v464_v62  ;;  %947 = vst [vmem:[#allocation2 + $0x260] sm:$0xff] %v608_v63  ;;  %v467_v0 = vpop.f32.mrb[4].mxu0  ;;  %v611_v1 = vpop.f32.mrb[4].mxu1 }
 0x16d   : > { %v468_v2 = vadd.f32 %v467_v0, %v3130_v47  ;;  %v612_v3 = vadd.f32 %v611_v1, %v3130_v47  ;;  %v469_v4 = vpop.f32.mrb[5].mxu0  ;;  %v613_v5 = vpop.f32.mrb[5].mxu1 }
 0x16e   : > { %v470_v6 = vadd.f32 %v469_v4, %v3133_v7  ;;  %v614_v8 = vadd.f32 %v613_v5, %v3133_v7 }
 0x16f   : > { %877 = vst [vmem:[#allocation2 + $0x30] sm:$0xff] %v468_v2  ;;  %949 = vst [vmem:[#allocation2 + $0x270] sm:$0xff] %v612_v3 }
 0x170   : > { %878 = vst [vmem:[#allocation2 + $0x38] sm:$0xff] %v470_v6  ;;  %950 = vst [vmem:[#allocation2 + $0x278] sm:$0xff] %v614_v8  ;;  %v473_v9 = vpop.f32.mrb[6].mxu0  ;;  %v617_v10 = vpop.f32.mrb[6].mxu1 }
 0x171   : > { %v474_v11 = vadd.f32 %v473_v9, %v3130_v47  ;;  %v618_v12 = vadd.f32 %v617_v10, %v3130_v47  ;;  %v475_v13 = vpop.f32.mrb[7].mxu0  ;;  %v619_v14 = vpop.f32.mrb[7].mxu1 }
 0x172   : > { %v476_v15 = vadd.f32 %v475_v13, %v3133_v7  ;;  %v620_v16 = vadd.f32 %v619_v14, %v3133_v7 }
 0x173   : > { %880 = vst [vmem:[#allocation2 + $0x48] sm:$0xff] %v474_v11  ;;  %952 = vst [vmem:[#allocation2 + $0x288] sm:$0xff] %v618_v12 }
 0x174   : > { %881 = vst [vmem:[#allocation2 + $0x50] sm:$0xff] %v476_v15  ;;  %953 = vst [vmem:[#allocation2 + $0x290] sm:$0xff] %v620_v16  ;;  %v479_v17 = vpop.f32.mrb[8].mxu0  ;;  %v623_v18 = vpop.f32.mrb[8].mxu1 }
 0x175   : > { %v480_v19 = vadd.f32 %v479_v17, %v3130_v47  ;;  %v624_v20 = vadd.f32 %v623_v18, %v3130_v47  ;;  %v481_v21 = vpop.f32.mrb[9].mxu0  ;;  %v625_v22 = vpop.f32.mrb[9].mxu1 }
 0x176   : > { %v482_v23 = vadd.f32 %v481_v21, %v3133_v7  ;;  %v626_v24 = vadd.f32 %v625_v22, %v3133_v7 }
 0x177   : > { %883 = vst [vmem:[#allocation2 + $0x60] sm:$0xff] %v480_v19  ;;  %955 = vst [vmem:[#allocation2 + $0x2a0] sm:$0xff] %v624_v20 }
 0x178   : > { %884 = vst [vmem:[#allocation2 + $0x68] sm:$0xff] %v482_v23  ;;  %956 = vst [vmem:[#allocation2 + $0x2a8] sm:$0xff] %v626_v24  ;;  %v485_v25 = vpop.f32.mrb[10].mxu0  ;;  %v629_v26 = vpop.f32.mrb[10].mxu1 }
 0x179   : > { %v486_v27 = vadd.f32 %v485_v25, %v3130_v47  ;;  %v630_v28 = vadd.f32 %v629_v26, %v3130_v47  ;;  %v487_v29 = vpop.f32.mrb[11].mxu0  ;;  %v631_v30 = vpop.f32.mrb[11].mxu1 }
 0x17a   : > { %v488_v31 = vadd.f32 %v487_v29, %v3133_v7  ;;  %v632_v32 = vadd.f32 %v631_v30, %v3133_v7 }
 0x17b   : > { %886 = vst [vmem:[#allocation2 + $0x78] sm:$0xff] %v486_v27  ;;  %958 = vst [vmem:[#allocation2 + $0x2b8] sm:$0xff] %v630_v28 }
 0x17c   : > { %887 = vst [vmem:[#allocation2 + $0x80] sm:$0xff] %v488_v31  ;;  %959 = vst [vmem:[#allocation2 + $0x2c0] sm:$0xff] %v632_v32  ;;  %v491_v33 = vpop.f32.mrb[12].mxu0  ;;  %v635_v34 = vpop.f32.mrb[12].mxu1 }
 0x17d   : > { %v492_v35 = vadd.f32 %v491_v33, %v3130_v47  ;;  %v636_v36 = vadd.f32 %v635_v34, %v3130_v47  ;;  %v493_v37 = vpop.f32.mrb[13].mxu0  ;;  %v637_v38 = vpop.f32.mrb[13].mxu1 }
 0x17e   : > { %v494_v40 = vadd.f32 %v493_v37, %v3133_v7  ;;  %v638_v41 = vadd.f32 %v637_v38, %v3133_v7 }
 0x17f   : > { %889 = vst [vmem:[#allocation2 + $0x90] sm:$0xff] %v492_v35  ;;  %961 = vst [vmem:[#allocation2 + $0x2d0] sm:$0xff] %v636_v36 }
 0x180   : > { %890 = vst [vmem:[#allocation2 + $0x98] sm:$0xff] %v494_v40  ;;  %962 = vst [vmem:[#allocation2 + $0x2d8] sm:$0xff] %v638_v41  ;;  %v497_v42 = vpop.f32.mrb[14].mxu0  ;;  %v641_v44 = vpop.f32.mrb[14].mxu1 }
 0x181   : > { %v498_v46 = vadd.f32 %v497_v42, %v3130_v47  ;;  %v642_v48 = vadd.f32 %v641_v44, %v3130_v47  ;;  %v499_v49 = vpop.f32.mrb[15].mxu0  ;;  %v643_v50 = vpop.f32.mrb[15].mxu1 }
 0x182   : > { %v500_v43 = vadd.f32 %v499_v49, %v3133_v7  ;;  %v644_v52 = vadd.f32 %v643_v50, %v3133_v7 }
 0x183   : > { %892 = vst [vmem:[#allocation2 + $0xa8] sm:$0xff] %v498_v46  ;;  %964 = vst [vmem:[#allocation2 + $0x2e8] sm:$0xff] %v642_v48 }
 0x184   : > { %893 = vst [vmem:[#allocation2 + $0xb0] sm:$0xff] %v500_v43  ;;  %965 = vst [vmem:[#allocation2 + $0x2f0] sm:$0xff] %v644_v52  ;;  %v503_v53 = vpop.f32.mrb[16].mxu0  ;;  %v2130_v54 = vpop.f32.mrb[16].mxu1 }
 0x185   : > { %v504_v55 = vadd.f32 %v503_v53, %v3130_v47  ;;  %v718_v56 = vadd.f32 %v2130_v54, %v3167_v51  ;;  %v505_v57 = vpop.f32.mrb[17].mxu0  ;;  %v712_v58 = vpop.f32.mrb[17].mxu1 }
 0x186   : > { %v506_v59 = vadd.f32 %v505_v57, %v3133_v7  ;;  %v713_v45 = vadd.f32 %v712_v58, %v3167_v51 }
 0x187   : > { %895 = vst [vmem:[#allocation2 + $0xc0] sm:$0xff] %v504_v55  ;;  %876 = vst [vmem:[#allocation2 + $0x28] sm:$0xff] %v718_v56 }
 0x188   : > { %896 = vst [vmem:[#allocation2 + $0xc8] sm:$0xff] %v506_v59  ;;  %873 = vst [vmem:[#allocation2 + $0x10] sm:$0xff] %v713_v45  ;;  %v509_v60 = vpop.f32.mrb[18].mxu0  ;;  %v2133_v61 = vpop.f32.mrb[18].mxu1 }
 0x189   : > { %v510_v62 = vadd.f32 %v509_v60, %v3130_v47  ;;  %v728_v63 = vadd.f32 %v2133_v61, %v3167_v51  ;;  %v511_v0 = vpop.f32.mrb[19].mxu0  ;;  %v722_v1 = vpop.f32.mrb[19].mxu1 }
 0x18a   : > { %v512_v2 = vadd.f32 %v511_v0, %v3133_v7  ;;  %v723_v3 = vadd.f32 %v722_v1, %v3167_v51 }
 0x18b   : > { %898 = vst [vmem:[#allocation2 + $0xd8] sm:$0xff] %v510_v62  ;;  %882 = vst [vmem:[#allocation2 + $0x58] sm:$0xff] %v728_v63 }
 0x18c   : > { %899 = vst [vmem:[#allocation2 + $0xe0] sm:$0xff] %v512_v2  ;;  %879 = vst [vmem:[#allocation2 + $0x40] sm:$0xff] %v723_v3  ;;  %v515_v4 = vpop.f32.mrb[20].mxu0  ;;  %v2136_v5 = vpop.f32.mrb[20].mxu1 }
 0x18d   : > { %v516_v6 = vadd.f32 %v515_v4, %v3130_v47  ;;  %v738_v8 = vadd.f32 %v2136_v5, %v3167_v51  ;;  %v517_v9 = vpop.f32.mrb[21].mxu0  ;;  %v732_v10 = vpop.f32.mrb[21].mxu1 }
 0x18e   : > { %v518_v11 = vadd.f32 %v517_v9, %v3133_v7  ;;  %v733_v12 = vadd.f32 %v732_v10, %v3167_v51 }
 0x18f   : > { %901 = vst [vmem:[#allocation2 + $0xf0] sm:$0xff] %v516_v6  ;;  %888 = vst [vmem:[#allocation2 + $0x88] sm:$0xff] %v738_v8 }
 0x190   : > { %902 = vst [vmem:[#allocation2 + $0xf8] sm:$0xff] %v518_v11  ;;  %885 = vst [vmem:[#allocation2 + $0x70] sm:$0xff] %v733_v12  ;;  %v521_v13 = vpop.f32.mrb[22].mxu0  ;;  %v2139_v14 = vpop.f32.mrb[22].mxu1 }
 0x191   : > { %v522_v15 = vadd.f32 %v521_v13, %v3130_v47  ;;  %v748_v16 = vadd.f32 %v2139_v14, %v3167_v51  ;;  %v523_v17 = vpop.f32.mrb[23].mxu0  ;;  %v742_v18 = vpop.f32.mrb[23].mxu1 }
 0x192   : > { %v524_v19 = vadd.f32 %v523_v17, %v3133_v7  ;;  %v743_v20 = vadd.f32 %v742_v18, %v3167_v51 }
 0x193   : > { %904 = vst [vmem:[#allocation2 + $0x108] sm:$0xff] %v522_v15  ;;  %894 = vst [vmem:[#allocation2 + $0xb8] sm:$0xff] %v748_v16 }
 0x194   : > { %905 = vst [vmem:[#allocation2 + $0x110] sm:$0xff] %v524_v19  ;;  %891 = vst [vmem:[#allocation2 + $0xa0] sm:$0xff] %v743_v20  ;;  %v527_v21 = vpop.f32.mrb[24].mxu0  ;;  %v2142_v22 = vpop.f32.mrb[24].mxu1 }
 0x195   : > { %v528_v23 = vadd.f32 %v527_v21, %v3130_v47  ;;  %v758_v24 = vadd.f32 %v2142_v22, %v3167_v51  ;;  %v529_v25 = vpop.f32.mrb[25].mxu0  ;;  %v752_v26 = vpop.f32.mrb[25].mxu1 }
 0x196   : > { %v530_v27 = vadd.f32 %v529_v25, %v3133_v7  ;;  %v753_v28 = vadd.f32 %v752_v26, %v3167_v51 }
 0x197   : > { %907 = vst [vmem:[#allocation2 + $0x120] sm:$0xff] %v528_v23  ;;  %900 = vst [vmem:[#allocation2 + $0xe8] sm:$0xff] %v758_v24 }
 0x198   : > { %908 = vst [vmem:[#allocation2 + $0x128] sm:$0xff] %v530_v27  ;;  %897 = vst [vmem:[#allocation2 + $0xd0] sm:$0xff] %v753_v28  ;;  %v533_v29 = vpop.f32.mrb[26].mxu0  ;;  %v2145_v30 = vpop.f32.mrb[26].mxu1 }
 0x199   : > { %v534_v31 = vadd.f32 %v533_v29, %v3130_v47  ;;  %v768_v32 = vadd.f32 %v2145_v30, %v3167_v51  ;;  %v535_v33 = vpop.f32.mrb[27].mxu0  ;;  %v762_v34 = vpop.f32.mrb[27].mxu1 }
 0x19a   : > { %v536_v35 = vadd.f32 %v535_v33, %v3133_v7  ;;  %v763_v36 = vadd.f32 %v762_v34, %v3167_v51 }
 0x19b   : > { %910 = vst [vmem:[#allocation2 + $0x138] sm:$0xff] %v534_v31  ;;  %906 = vst [vmem:[#allocation2 + $0x118] sm:$0xff] %v768_v32 }
 0x19c   : > { %911 = vst [vmem:[#allocation2 + $0x140] sm:$0xff] %v536_v35  ;;  %903 = vst [vmem:[#allocation2 + $0x100] sm:$0xff] %v763_v36  ;;  %v539_v37 = vpop.f32.mrb[28].mxu0  ;;  %v2148_v38 = vpop.f32.mrb[28].mxu1 }
 0x19d   : > { %v540_v39 = vadd.f32 %v539_v37, %v3130_v47  ;;  %v778_v40 = vadd.f32 %v2148_v38, %v3167_v51  ;;  %v541_v41 = vpop.f32.mrb[29].mxu0  ;;  %v772_v42 = vpop.f32.mrb[29].mxu1 }
 0x19e   : > { %v542_v44 = vadd.f32 %v541_v41, %v3133_v7  ;;  %v773_v46 = vadd.f32 %v772_v42, %v3167_v51 }
 0x19f   : > { %913 = vst [vmem:[#allocation2 + $0x150] sm:$0xff] %v540_v39  ;;  %912 = vst [vmem:[#allocation2 + $0x148] sm:$0xff] %v778_v40 }
 0x1a0   : > { %914 = vst [vmem:[#allocation2 + $0x158] sm:$0xff] %v542_v44  ;;  %909 = vst [vmem:[#allocation2 + $0x130] sm:$0xff] %v773_v46  ;;  %v545_v48 = vpop.f32.mrb[30].mxu0  ;;  %v2151_v49 = vpop.f32.mrb[30].mxu1 }
 0x1a1   : > { %v546_v50 = vadd.f32 %v545_v48, %v3130_v47  ;;  %v788_v43 = vadd.f32 %v2151_v49, %v3167_v51  ;;  %v547_v52 = vpop.f32.mrb[31].mxu0  ;;  %v782_v53 = vpop.f32.mrb[31].mxu1 }
 0x1a2   : > { %v548_v54 = vadd.f32 %v547_v52, %v3133_v7  ;;  %v783_v55 = vadd.f32 %v782_v53, %v3167_v51 }
 0x1a3   : > { %916 = vst [vmem:[#allocation2 + $0x168] sm:$0xff] %v546_v50  ;;  %918 = vst [vmem:[#allocation2 + $0x178] sm:$0xff] %v788_v43 }
 0x1a4   : > { %917 = vst [vmem:[#allocation2 + $0x170] sm:$0xff] %v548_v54  ;;  %915 = vst [vmem:[#allocation2 + $0x160] sm:$0xff] %v783_v55  ;;  %v551_v56 = vpop.f32.mrb[32].mxu0  ;;  %v2154_v57 = vpop.f32.mrb[32].mxu1 }
 0x1a5   : > { %v552_v58 = vadd.f32 %v551_v56, %v3130_v47  ;;  %v798_v59 = vadd.f32 %v2154_v57, %v3167_v51  ;;  %v553_v45 = vpop.f32.mrb[33].mxu0  ;;  %v792_v60 = vpop.f32.mrb[33].mxu1 }
 0x1a6   : > { %v554_v61 = vadd.f32 %v553_v45, %v3133_v7  ;;  %v793_v62 = vadd.f32 %v792_v60, %v3167_v51 }
 0x1a7   : > { %919 = vst [vmem:[#allocation2 + $0x180] sm:$0xff] %v552_v58  ;;  %924 = vst [vmem:[#allocation2 + $0x1a8] sm:$0xff] %v798_v59 }
 0x1a8   : > { %920 = vst [vmem:[#allocation2 + $0x188] sm:$0xff] %v554_v61  ;;  %921 = vst [vmem:[#allocation2 + $0x190] sm:$0xff] %v793_v62  ;;  %v557_v63 = vpop.f32.mrb[34].mxu0  ;;  %v2157_v0 = vpop.f32.mrb[34].mxu1 }
 0x1a9   : > { %v558_v1 = vadd.f32 %v557_v63, %v3130_v47  ;;  %v808_v2 = vadd.f32 %v2157_v0, %v3167_v51  ;;  %v559_v3 = vpop.f32.mrb[35].mxu0  ;;  %v802_v4 = vpop.f32.mrb[35].mxu1 }
 0x1aa   : > { %v560_v5 = vadd.f32 %v559_v3, %v3133_v7  ;;  %v803_v6 = vadd.f32 %v802_v4, %v3167_v51 }
 0x1ab   : > { %922 = vst [vmem:[#allocation2 + $0x198] sm:$0xff] %v558_v1  ;;  %930 = vst [vmem:[#allocation2 + $0x1d8] sm:$0xff] %v808_v2 }
 0x1ac   : > { %923 = vst [vmem:[#allocation2 + $0x1a0] sm:$0xff] %v560_v5  ;;  %927 = vst [vmem:[#allocation2 + $0x1c0] sm:$0xff] %v803_v6  ;;  %v563_v8 = vpop.f32.mrb[36].mxu0  ;;  %v2160_v9 = vpop.f32.mrb[36].mxu1 }
 0x1ad   : > { %v564_v10 = vadd.f32 %v563_v8, %v3130_v47  ;;  %v818_v11 = vadd.f32 %v2160_v9, %v3167_v51  ;;  %v565_v12 = vpop.f32.mrb[37].mxu0  ;;  %v812_v13 = vpop.f32.mrb[37].mxu1 }
 0x1ae   : > { %v566_v14 = vadd.f32 %v565_v12, %v3133_v7  ;;  %v813_v15 = vadd.f32 %v812_v13, %v3167_v51 }
 0x1af   : > { %925 = vst [vmem:[#allocation2 + $0x1b0] sm:$0xff] %v564_v10  ;;  %936 = vst [vmem:[#allocation2 + $0x208] sm:$0xff] %v818_v11 }
 0x1b0   : > { %926 = vst [vmem:[#allocation2 + $0x1b8] sm:$0xff] %v566_v14  ;;  %933 = vst [vmem:[#allocation2 + $0x1f0] sm:$0xff] %v813_v15  ;;  %v569_v16 = vpop.f32.mrb[38].mxu0  ;;  %v2163_v17 = vpop.f32.mrb[38].mxu1 }
 0x1b1   : > { %v570_v18 = vadd.f32 %v569_v16, %v3130_v47  ;;  %v828_v19 = vadd.f32 %v2163_v17, %v3167_v51  ;;  %v571_v20 = vpop.f32.mrb[39].mxu0  ;;  %v822_v21 = vpop.f32.mrb[39].mxu1 }
 0x1b2   : > { %v572_v22 = vadd.f32 %v571_v20, %v3133_v7  ;;  %v823_v23 = vadd.f32 %v822_v21, %v3167_v51 }
 0x1b3   : > { %928 = vst [vmem:[#allocation2 + $0x1c8] sm:$0xff] %v570_v18  ;;  %942 = vst [vmem:[#allocation2 + $0x238] sm:$0xff] %v828_v19 }
 0x1b4   : > { %929 = vst [vmem:[#allocation2 + $0x1d0] sm:$0xff] %v572_v22  ;;  %939 = vst [vmem:[#allocation2 + $0x220] sm:$0xff] %v823_v23  ;;  %v575_v24 = vpop.f32.mrb[40].mxu0  ;;  %v2166_v25 = vpop.f32.mrb[40].mxu1 }
 0x1b5   : > { %v576_v26 = vadd.f32 %v575_v24, %v3130_v47  ;;  %v838_v27 = vadd.f32 %v2166_v25, %v3167_v51  ;;  %v577_v28 = vpop.f32.mrb[41].mxu0  ;;  %v832_v29 = vpop.f32.mrb[41].mxu1 }
 0x1b6   : > { %v578_v30 = vadd.f32 %v577_v28, %v3133_v7  ;;  %v833_v31 = vadd.f32 %v832_v29, %v3167_v51 }
 0x1b7   : > { %931 = vst [vmem:[#allocation2 + $0x1e0] sm:$0xff] %v576_v26  ;;  %948 = vst [vmem:[#allocation2 + $0x268] sm:$0xff] %v838_v27 }
 0x1b8   : > { %932 = vst [vmem:[#allocation2 + $0x1e8] sm:$0xff] %v578_v30  ;;  %945 = vst [vmem:[#allocation2 + $0x250] sm:$0xff] %v833_v31  ;;  %v581_v32 = vpop.f32.mrb[42].mxu0  ;;  %v2169_v33 = vpop.f32.mrb[42].mxu1 }
 0x1b9   : > { %v582_v34 = vadd.f32 %v581_v32, %v3130_v47  ;;  %v848_v35 = vadd.f32 %v2169_v33, %v3167_v51  ;;  %v583_v36 = vpop.f32.mrb[43].mxu0  ;;  %v842_v37 = vpop.f32.mrb[43].mxu1 }
 0x1ba   : > { %v584_v38 = vadd.f32 %v583_v36, %v3133_v7  ;;  %v843_v39 = vadd.f32 %v842_v37, %v3167_v51 }
 0x1bb   : > { %934 = vst [vmem:[#allocation2 + $0x1f8] sm:$0xff] %v582_v34  ;;  %954 = vst [vmem:[#allocation2 + $0x298] sm:$0xff] %v848_v35 }
 0x1bc   : > { %935 = vst [vmem:[#allocation2 + $0x200] sm:$0xff] %v584_v38  ;;  %951 = vst [vmem:[#allocation2 + $0x280] sm:$0xff] %v843_v39  ;;  %v587_v40 = vpop.f32.mrb[44].mxu0  ;;  %v2172_v41 = vpop.f32.mrb[44].mxu1 }
 0x1bd   : > { %v588_v42 = vadd.f32 %v587_v40, %v3130_v47  ;;  %v858_v44 = vadd.f32 %v2172_v41, %v3167_v51  ;;  %v589_v46 = vpop.f32.mrb[45].mxu0  ;;  %v852_v48 = vpop.f32.mrb[45].mxu1 }
 0x1be   : > { %v590_v49 = vadd.f32 %v589_v46, %v3133_v7  ;;  %v853_v50 = vadd.f32 %v852_v48, %v3167_v51 }
 0x1bf   : > { %937 = vst [vmem:[#allocation2 + $0x210] sm:$0xff] %v588_v42  ;;  %960 = vst [vmem:[#allocation2 + $0x2c8] sm:$0xff] %v858_v44 }
 0x1c0   : > { %938 = vst [vmem:[#allocation2 + $0x218] sm:$0xff] %v590_v49  ;;  %957 = vst [vmem:[#allocation2 + $0x2b0] sm:$0xff] %v853_v50  ;;  %v593_v43 = vpop.f32.mrb[46].mxu0  ;;  %v2175_v52 = vpop.f32.mrb[46].mxu1 }
 0x1c1   : > { %v594_v53 = vadd.f32 %v593_v43, %v3130_v47  ;;  %v868_v54 = vadd.f32 %v2175_v52, %v3167_v51  ;;  %v595_v55 = vpop.f32.mrb[47].mxu0  ;;  %v862_v56 = vpop.f32.mrb[47].mxu1 }
 0x1c2   : > { %v596_v57 = vadd.f32 %v595_v55, %v3133_v7  ;;  %v863_v58 = vadd.f32 %v862_v56, %v3167_v51 }
 0x1c3   : > { %940 = vst [vmem:[#allocation2 + $0x228] sm:$0xff] %v594_v53  ;;  %966 = vst [vmem:[#allocation2 + $0x2f8] sm:$0xff] %v868_v54 }
 0x1c4   : > { %941 = vst [vmem:[#allocation2 + $0x230] sm:$0xff] %v596_v57  ;;  %963 = vst [vmem:[#allocation2 + $0x2e0] sm:$0xff] %v863_v58 }
 0x1c5 PF: > { %v1005_v59 = vld [vmem:[#allocation2 + $0x188] sm:$0xff]  ;;  %v1006_v45 = vld [vmem:[#allocation2 + $0x1a0] sm:$0xff]  ;;  %s1888_s13 = sshll.u32 %s2743_s3, 7  ;;  %v1007_v62 = vld [vmem:[#allocation2 + $0x1b8] sm:$0xff]  ;;  %s1903_s27 = sshll.u32 %s2743_s3, 5 }
 0x1c6   : > { %v989_v60 = vld [vmem:[#allocation2 + $0x8] sm:$0xff]  ;;  %v2240_v47 = vpack.c.bf16 %v1006_v45, %v1005_v59  ;;  %v990_v61 = vld [vmem:[#allocation2 + $0x20] sm:$0xff]  ;;  %v1008_v63 = vld [vmem:[#allocation2 + $0x1d0] sm:$0xff]  ;;  %s968_s17 = sshra.s32 %s1888_s13, 3  ;;  %s1897_s4 = sshll.u32 %s2747_s26, 6 }
 0x1c7   : > { %v2242_v7 = vpack.c.bf16 %v990_v61, %v989_v60  ;;  %v2244_v0 = vpack.c.bf16 %v1008_v63, %v1007_v62  ;;  %s1902_s18 = smul.u32 24, %s968_s17  ;;  %v991_v51 = vld [vmem:[#allocation2 + $0x38] sm:$0xff]  ;;  %v992_v1 = vld [vmem:[#allocation2 + $0x50] sm:$0xff]  ;;  %v1009_v2 = vld [vmem:[#allocation2 + $0x1e8] sm:$0xff]  ;;  %s1738_s11 = sshll.u32 %s3009_s1, 4  ;;  %s3547_s11 = int_to_ptr.vmem [resolvable:$true] %s1738_s11 }
 0x1c8   : > { %2241 = vmatprep.subr.bf16.mxu0 %v2240_v47  ;;  %v1010_v3 = vld [vmem:[#allocation2 + $0x200] sm:$0xff]  ;;  %v2246_v4 = vpack.c.bf16 %v992_v1, %v991_v51  ;;  %v993_v8 = vld [vmem:[#allocation2 + $0x68] sm:$0xff]  ;;  %v1011_v10 = vld [vmem:[#allocation2 + $0x218] sm:$0xff]  ;;  %s1735_s15 = sadd.s32 %s1903_s27, %s1897_s4  ;;  %s1704_s9 = scalar_lea.sflag [#allocation11], %s3003_s20 }
 0x1c9   : > { %2243 = vmatpush3.bf16.xpose.msra.mxu0 %v2242_v7  ;;  %v2248_v5 = vpack.c.bf16 %v1010_v3, %v1009_v2  ;;  %s3238_s19 = scalar_lea.vmem [#allocation2], %s1902_s18  ;;  %v994_v9 = vld [vmem:[#allocation2 + $0x80] sm:$0xff]  ;;  %v995_v14 = vld [vmem:[#allocation2 + $0x98] sm:$0xff]  ;;  %v996_v15 = vld [vmem:[#allocation2 + $0xb0] sm:$0xff]  ;;  %s1898_s14 = sshll.u32 %s1735_s15, 7 }
 0x1ca   : > { %2245 = vmatprep.subr.bf16.mxu0 %v2244_v0  ;;  %v2250_v12 = vpack.c.bf16 %v994_v9, %v993_v8  ;;  %v1013_v16 = vld [vmem:[#allocation2 + $0x248] sm:$0xff]  ;;  %v1014_v17 = vld [vmem:[#allocation2 + $0x260] sm:$0xff]  ;;  %v2254_v18 = vpack.c.bf16 %v996_v15, %v995_v14  ;;  %v1015_v22 = vld [vmem:[#allocation2 + $0x278] sm:$0xff]  ;;  %s3552_s7 = scalar_lea.hbm %s3709_s5, %s1898_s14  ;;  %s2601_s17 = scalar_lea.vmem %s3547_s11, 4096 }
 0x1cb   : > { %v973_v6 = vld [vmem:[%s3238_s19] sm:$0xff]  ;;  %v1012_v11 = vld [vmem:[#allocation2 + $0x230] sm:$0xff]  ;;  %v2256_v19 = vpack.c.bf16 %v1014_v17, %v1013_v16  ;;  %v997_v20 = vld [vmem:[#allocation2 + $0xc8] sm:$0xff]  ;;  %p2602_p7 = scmp.ne.s32.totalorder %s3547_s11, %s2601_s17  ;;  %p3741_p9 = scmp.ne.s32.totalorder %s3727_s10, 0 }
 0x1cc   : > { %1984 = vmatprep.mubr.f32.mxu0 %v973_v6  ;;  %v2252_v13 = vpack.c.bf16 %v1012_v11, %v1011_v10  ;;  %v998_v21 = vld [vmem:[#allocation2 + $0xe0] sm:$0xff]  ;;  %v1016_v23 = vld [vmem:[#allocation2 + $0x290] sm:$0xff]  ;;  %v999_v26 = vld [vmem:[#allocation2 + $0xf8] sm:$0xff]  ;;  %s2768_s18 = smov [#allocation10]  }
 0x1cd   : > { %v2258_v24 = vpack.c.bf16 %v998_v21, %v997_v20  ;;  %v2260_v25 = vpack.c.bf16 %v1016_v23, %v1015_v22  ;;  %v1000_v27 = vld [vmem:[#allocation2 + $0x110] sm:$0xff]  ;;  %v1017_v28 = vld [vmem:[#allocation2 + $0x2a8] sm:$0xff]  ;;  %v1018_v29 = vld [vmem:[#allocation2 + $0x2c0] sm:$0xff]  ;;  %p2603_p11 = pnand %p2602_p7, %p3741_p9 }
 0x1ce   : > { %v2262_v30 = vpack.c.bf16 %v1000_v27, %v999_v26  ;;  %v2264_v31 = vpack.c.bf16 %v1018_v29, %v1017_v28  ;;  %v1001_v32 = vld [vmem:[#allocation2 + $0x128] sm:$0xff]  ;;  %v1002_v33 = vld [vmem:[#allocation2 + $0x140] sm:$0xff]  ;;  %v1019_v34 = vld [vmem:[#allocation2 + $0x2d8] sm:$0xff] }
 0x1cf   : > { %v1020_v35 = vld [vmem:[#allocation2 + $0x2f0] sm:$0xff]  ;;  %v2266_v36 = vpack.c.bf16 %v1002_v33, %v1001_v32  ;;  %v1003_v38 = vld [vmem:[#allocation2 + $0x158] sm:$0xff]  ;;  %v976_v44 = vld [vmem:[%s3238_s19 + $0x48] sm:$0xff]  ;;  %p2604_p13 = pneg %p2603_p11 }
 0x1d0   : > { %v2268_v37 = vpack.c.bf16 %v1020_v35, %v1019_v34  ;;  %v1004_v39 = vld [vmem:[#allocation2 + $0x170] sm:$0xff]  ;;  %v974_v41 = vld [vmem:[%s3238_s19 + $0x18] sm:$0xff]  ;;  %v977_v46 = vld [vmem:[%s3238_s19 + $0x60] sm:$0xff] }
 0x1d1   : > { %2247 = vmatpush3.bf16.xpose.msra.mxu0 %v2246_v4  ;;  %v2270_v40 = vpack.c.bf16 %v1004_v39, %v1003_v38  ;;  %v975_v42 = vld [vmem:[%s3238_s19 + $0x30] sm:$0xff]  ;;  %v978_v48 = vld [vmem:[%s3238_s19 + $0x78] sm:$0xff]  ;;  %v980_v50 = vld [vmem:[%s3238_s19 + $0xa8] sm:$0xff] }
 0x1d2   : > { %2249 = vmatprep.subr.bf16.mxu0 %v2248_v5  ;;  %v979_v49 = vld [vmem:[%s3238_s19 + $0x90] sm:$0xff]  ;;  %v981_v43 = vld [vmem:[%s3238_s19 + $0xc0] sm:$0xff]  ;;  %v982_v52 = vld [vmem:[%s3238_s19 + $0xd8] sm:$0xff] }
 0x1d3   : > { %v983_v53 = vld [vmem:[%s3238_s19 + $0xf0] sm:$0xff]  ;;  %v984_v54 = vld [vmem:[%s3238_s19 + $0x108] sm:$0xff]  ;;  %v985_v55 = vld [vmem:[%s3238_s19 + $0x120] sm:$0xff] }
 0x1d4   : > { %v986_v56 = vld [vmem:[%s3238_s19 + $0x138] sm:$0xff]  ;;  %v987_v57 = vld [vmem:[%s3238_s19 + $0x150] sm:$0xff]  ;;  %v988_v58 = vld [vmem:[%s3238_s19 + $0x168] sm:$0xff] }
 0x1d9   : > { %2251 = vmatpush3.bf16.xpose.msra.mxu0 %v2250_v12 }
 0x1da   : > { %2253 = vmatprep.subr.bf16.mxu0 %v2252_v13 }
 0x1e1   : > { %2255 = vmatpush3.bf16.xpose.msra.mxu0 %v2254_v18 }
 0x1e2   : > { %2257 = vmatprep.subr.bf16.mxu0 %v2256_v19 }
 0x1e9   : > { %2259 = vmatpush3.bf16.xpose.msra.mxu0 %v2258_v24 }
 0x1ea   : > { %2261 = vmatprep.subr.bf16.mxu0 %v2260_v25 }
 0x1f1   : > { %2263 = vmatpush3.bf16.xpose.msra.mxu0 %v2262_v30 }
 0x1f2   : > { %2265 = vmatprep.subr.bf16.mxu0 %v2264_v31 }
 0x1f9   : > { %2267 = vmatpush3.bf16.xpose.msra.mxu0 %v2266_v36 }
 0x1fa   : > { %2269 = vmatprep.subr.bf16.mxu0 %v2268_v37 }
 0x201   : > { %2271 = vmatpush3.bf16.xpose.msra.mxu0 %v2270_v40  ;;  %v1037_v40 = vld [vmem:[#allocation2 + $0x190] sm:$0xff] }
 0x208   : > { %1985 = vmatmul.mubr.f32.vlgmr.msra.gmra.mrb[0].mxu0 %v973_v6 }
 0x209   : > { %1986 = vmatprep.mubr.f32.mxu0 %v974_v41 }
 0x20c   : > { %1987 = vmatmul.mubr.f32.gmra.mrb[2].mxu0 %v974_v41  ;;  %v1038_v41 = vld [vmem:[#allocation2 + $0x1a8] sm:$0xff] }
 0x20d   : > { %1988 = vmatprep.mubr.f32.mxu0 %v975_v42 }
 0x210   : > { %1989 = vmatmul.mubr.f32.gmra.mrb[4].mxu0 %v975_v42  ;;  %v1021_v42 = vld [vmem:[#allocation2 + $0x10] sm:$0xff] }
 0x211   : > { %1990 = vmatprep.mubr.f32.mxu0 %v976_v44 }
 0x214   : > { %1991 = vmatmul.mubr.f32.gmra.mrb[6].mxu0 %v976_v44  ;;  %v2272_v44 = vpack.c.bf16 %v1038_v41, %v1037_v40 }
 0x215   : > { %1992 = vmatprep.mubr.f32.mxu0 %v977_v46 }
 0x216   : > { %2273 = vmatprep.subr.bf16.mxu1 %v2272_v44 }
 0x218   : > { %1993 = vmatmul.mubr.f32.gmra.mrb[8].mxu0 %v977_v46  ;;  %v1022_v46 = vld [vmem:[#allocation2 + $0x28] sm:$0xff] }
 0x219   : > { %1994 = vmatprep.mubr.f32.mxu0 %v978_v48 }
 0x21c   : > { %1995 = vmatmul.mubr.f32.gmra.mrb[10].mxu0 %v978_v48  ;;  %v1039_v48 = vld [vmem:[#allocation2 + $0x1c0] sm:$0xff] }
 0x21d   : > { %1996 = vmatprep.mubr.f32.mxu0 %v979_v49 }
 0x220   : > { %1997 = vmatmul.mubr.f32.gmra.mrb[12].mxu0 %v979_v49  ;;  %v1040_v49 = vld [vmem:[#allocation2 + $0x1d8] sm:$0xff] }
 0x221   : > { %1998 = vmatprep.mubr.f32.mxu0 %v980_v50 }
 0x224   : > { %1999 = vmatmul.mubr.f32.gmra.mrb[14].mxu0 %v980_v50  ;;  %v2274_v50 = vpack.c.bf16 %v1022_v46, %v1021_v42 }
 0x225   : > { %2000 = vmatprep.mubr.f32.mxu0 %v981_v43 }
 0x226   : > { %2275 = vmatpush3.bf16.msra.mxu1 %v2274_v50 }
 0x228   : > { %2001 = vmatmul.mubr.f32.gmra.mrb[16].mxu0 %v981_v43  ;;  %v2276_v43 = vpack.c.bf16 %v1040_v49, %v1039_v48 }
 0x229   : > { %2002 = vmatprep.mubr.f32.mxu0 %v982_v52 }
 0x22a   : > { %2277 = vmatprep.subr.bf16.mxu1 %v2276_v43 }
 0x22c   : > { %2003 = vmatmul.mubr.f32.gmra.mrb[18].mxu0 %v982_v52  ;;  %v1023_v52 = vld [vmem:[#allocation2 + $0x40] sm:$0xff] }
 0x22d   : > { %2004 = vmatprep.mubr.f32.mxu0 %v983_v53 }
 0x230   : > { %2005 = vmatmul.mubr.f32.gmra.mrb[20].mxu0 %v983_v53  ;;  %v1024_v53 = vld [vmem:[#allocation2 + $0x58] sm:$0xff] }
 0x231   : > { %2006 = vmatprep.mubr.f32.mxu0 %v984_v54 }
 0x234   : > { %2007 = vmatmul.mubr.f32.gmra.mrb[22].mxu0 %v984_v54  ;;  %v1041_v54 = vld [vmem:[#allocation2 + $0x1f0] sm:$0xff] }
 0x235   : > { %2008 = vmatprep.mubr.f32.mxu0 %v985_v55 }
 0x238   : > { %2009 = vmatmul.mubr.f32.gmra.mrb[24].mxu0 %v985_v55  ;;  %v1042_v55 = vld [vmem:[#allocation2 + $0x208] sm:$0xff] }
 0x239   : > { %2010 = vmatprep.mubr.f32.mxu0 %v986_v56 }
 0x23c   : > { %2011 = vmatmul.mubr.f32.gmra.mrb[26].mxu0 %v986_v56  ;;  %v2278_v56 = vpack.c.bf16 %v1024_v53, %v1023_v52 }
 0x23d   : > { %2012 = vmatprep.mubr.f32.mxu0 %v987_v57 }
 0x23e   : > { %2279 = vmatpush3.bf16.msra.mxu1 %v2278_v56 }
 0x240   : > { %2013 = vmatmul.mubr.f32.gmra.mrb[28].mxu0 %v987_v57  ;;  %v2280_v57 = vpack.c.bf16 %v1042_v55, %v1041_v54 }
 0x241   : > { %2014 = vmatprep.mubr.f32.mxu0 %v988_v58 }
 0x242   : > { %2281 = vmatprep.subr.bf16.mxu1 %v2280_v57 }
 0x244   : > { %2015 = vmatmul.mubr.f32.gmra.mrb[30].mxu0 %v988_v58  ;;  %v1025_v58 = vld [vmem:[#allocation2 + $0x70] sm:$0xff] }
 0x2db   : > { %v3256_v59 = vpop.f32.mrb[0].mxu0 }
 0x2dc   : > { %v3258_v45 = vpop.f32.mrb[1].mxu0 }
 0x2dd   : > { %v1214_v60 = vmax.f32 %v3256_v59, %v3258_v45 }
 0x2df   : > { %1215 = vmax.xlane.f32.xlu0 %v1214_v60  ;;  %v3262_v47 = vpop.f32.mrb[2].mxu0  ;;  %v1026_v60 = vld [vmem:[#allocation2 + $0x88] sm:$0xff] }
 0x2e0   : > { %v3264_v61 = vpop.f32.mrb[3].mxu0 }
 0x2e1   : > { %v1217_v62 = vmax.f32 %v3262_v47, %v3264_v61 }
 0x2e3   : > { %1218 = vmax.xlane.f32.xlu0 %v1217_v62  ;;  %v3268_v63 = vpop.f32.mrb[4].mxu0  ;;  %v1043_v62 = vld [vmem:[#allocation2 + $0x220] sm:$0xff] }
 0x2e4   : > { %v3270_v7 = vpop.f32.mrb[5].mxu0 }
 0x2e5   : > { %v1220_v0 = vmax.f32 %v3268_v63, %v3270_v7 }
 0x2e7   : > { %1221 = vmax.xlane.f32.xlu1 %v1220_v0  ;;  %v3274_v51 = vpop.f32.mrb[6].mxu0  ;;  %v1044_v0 = vld [vmem:[#allocation2 + $0x238] sm:$0xff] }
 0x2e8   : > { %v3276_v1 = vpop.f32.mrb[7].mxu0 }
 0x2e9   : > { %v1223_v2 = vmax.f32 %v3274_v51, %v3276_v1 }
 0x2eb   : > { %1224 = vmax.xlane.f32.xlu1 %v1223_v2  ;;  %v3280_v3 = vpop.f32.mrb[8].mxu0  ;;  %v2282_v2 = vpack.c.bf16 %v1026_v60, %v1025_v58 }
 0x2ec   : > { %v3282_v4 = vpop.f32.mrb[9].mxu0 }
 0x2ed   : > { %v1226_v5 = vmax.f32 %v3280_v3, %v3282_v4  ;;  %2283 = vmatpush3.bf16.msra.mxu1 %v2282_v2 }
 0x2ef   : > { %1227 = vmax.xlane.f32.xlu0 %v1226_v5  ;;  %v3286_v6 = vpop.f32.mrb[10].mxu0  ;;  %v2284_v5 = vpack.c.bf16 %v1044_v0, %v1043_v62 }
 0x2f0   : > { %v3288_v8 = vpop.f32.mrb[11].mxu0 }
 0x2f1   : > { %v1229_v9 = vmax.f32 %v3286_v6, %v3288_v8  ;;  %2285 = vmatprep.subr.bf16.mxu1 %v2284_v5 }
 0x2f3   : > { %1230 = vmax.xlane.f32.xlu1 %v1229_v9  ;;  %v3292_v10 = vpop.f32.mrb[12].mxu0  ;;  %v1027_v9 = vld [vmem:[#allocation2 + $0xa0] sm:$0xff] }
 0x2f4   : > { %v3294_v11 = vpop.f32.mrb[13].mxu0 }
 0x2f5   : > { %v1232_v12 = vmax.f32 %v3292_v10, %v3294_v11 }
 0x2f7   : > { %1233 = vmax.xlane.f32.xlu0 %v1232_v12  ;;  %v3298_v13 = vpop.f32.mrb[14].mxu0  ;;  %v1028_v12 = vld [vmem:[#allocation2 + $0xb8] sm:$0xff] }
 0x2f8   : > { %v3300_v14 = vpop.f32.mrb[15].mxu0 }
 0x2f9   : > { %v1235_v15 = vmax.f32 %v3298_v13, %v3300_v14 }
 0x2fb   : > { %1236 = vmax.xlane.f32.xlu1 %v1235_v15  ;;  %v3304_v16 = vpop.f32.mrb[16].mxu0  ;;  %v1045_v15 = vld [vmem:[#allocation2 + $0x250] sm:$0xff] }
 0x2fc   : > { %v3306_v17 = vpop.f32.mrb[17].mxu0 }
 0x2fd   : > { %v1238_v18 = vmax.f32 %v3304_v16, %v3306_v17 }
 0x2ff   : > { %1239 = vmax.xlane.f32.xlu0 %v1238_v18  ;;  %v3310_v19 = vpop.f32.mrb[18].mxu0  ;;  %v1046_v18 = vld [vmem:[#allocation2 + $0x268] sm:$0xff] }
 0x300   : > { %v3312_v20 = vpop.f32.mrb[19].mxu0 }
 0x301   : > { %v1241_v21 = vmax.f32 %v3310_v19, %v3312_v20 }
 0x303   : > { %1242 = vmax.xlane.f32.xlu1 %v1241_v21  ;;  %v3316_v22 = vpop.f32.mrb[20].mxu0  ;;  %v2286_v21 = vpack.c.bf16 %v1028_v12, %v1027_v9 }
 0x304   : > { %v3318_v23 = vpop.f32.mrb[21].mxu0 }
 0x305   : > { %v1244_v24 = vmax.f32 %v3316_v22, %v3318_v23  ;;  %2287 = vmatpush3.bf16.msra.mxu1 %v2286_v21 }
 0x307   : > { %1245 = vmax.xlane.f32.xlu0 %v1244_v24  ;;  %v3322_v25 = vpop.f32.mrb[22].mxu0  ;;  %v2288_v24 = vpack.c.bf16 %v1046_v18, %v1045_v15 }
 0x308   : > { %v3324_v26 = vpop.f32.mrb[23].mxu0 }
 0x309   : > { %v1247_v27 = vmax.f32 %v3322_v25, %v3324_v26  ;;  %2289 = vmatprep.subr.bf16.mxu1 %v2288_v24 }
 0x30b   : > { %1248 = vmax.xlane.f32.xlu1 %v1247_v27  ;;  %v3328_v28 = vpop.f32.mrb[24].mxu0  ;;  %v1029_v27 = vld [vmem:[#allocation2 + $0xd0] sm:$0xff] }
 0x30c   : > { %v3330_v29 = vpop.f32.mrb[25].mxu0 }
 0x30d   : > { %v1250_v30 = vmax.f32 %v3328_v28, %v3330_v29 }
 0x30f   : > { %1251 = vmax.xlane.f32.xlu0 %v1250_v30  ;;  %v3334_v31 = vpop.f32.mrb[26].mxu0  ;;  %v1030_v30 = vld [vmem:[#allocation2 + $0xe8] sm:$0xff] }
 0x310   : > { %v3336_v32 = vpop.f32.mrb[27].mxu0 }
 0x311   : > { %v1253_v33 = vmax.f32 %v3334_v31, %v3336_v32 }
 0x313   : > { %1254 = vmax.xlane.f32.xlu1 %v1253_v33  ;;  %v3340_v34 = vpop.f32.mrb[28].mxu0  ;;  %v2290_v33 = vpack.c.bf16 %v1030_v30, %v1029_v27 }
 0x314   : > { %v3342_v35 = vpop.f32.mrb[29].mxu0 }
 0x315   : > { %v1256_v36 = vmax.f32 %v3340_v34, %v3342_v35  ;;  %2291 = vmatpush3.bf16.msra.mxu1 %v2290_v33 }
 0x317   : > { %1257 = vmax.xlane.f32.xlu0 %v1256_v36  ;;  %v3346_v37 = vpop.f32.mrb[30].mxu0 }
 0x318   : > { %v3348_v38 = vpop.f32.mrb[31].mxu0 }
 0x319   : > { %v1259_v39 = vmax.f32 %v3346_v37, %v3348_v38 }
 0x31b   : > { %1260 = vmax.xlane.f32.xlu1 %v1259_v39 }
 0x36c   : > { %v1216_v36 = vpop.xlane.xlu0 %1215 }
 0x36d   : > { %v1262_v39 = vsub.f32 %v3256_v59, %v1216_v36  ;;  %v1263_v40 = vsub.f32 %v3258_v45, %v1216_v36 }
 0x36f   : > { %v1294_v41 = vmul.f32 1.442695, %v1262_v39  ;;  %v1296_v42 = vmul.f32 1.442695, %v1263_v40 }
 0x370   : > { %v1219_v44 = vpop.xlane.xlu0 %1218 }
 0x371   : > { %2447 = vpow2.f32 %v1294_v41  ;;  %v1264_v46 = vsub.f32 %v3262_v47, %v1219_v44  ;;  %v1265_v48 = vsub.f32 %v3264_v61, %v1219_v44 }
 0x372   : > { %2449 = vpow2.f32 %v1296_v42 }
 0x373   : > { %v1298_v49 = vmul.f32 1.442695, %v1264_v46  ;;  %v1300_v50 = vmul.f32 1.442695, %v1265_v48 }
 0x374   : > { %v1222_v43 = vpop.xlane.xlu1 %1221 }
 0x375   : > { %2451 = vpow2.f32 %v1298_v49  ;;  %v1266_v52 = vsub.f32 %v3268_v63, %v1222_v43  ;;  %v1267_v53 = vsub.f32 %v3270_v7, %v1222_v43  ;;  %v1048_v43 = vld [vmem:[#allocation2 + $0x298] sm:$0xff] }
 0x376   : > { %2453 = vpow2.f32 %v1300_v50  ;;  %v1047_v50 = vld [vmem:[#allocation2 + $0x280] sm:$0xff] }
 0x377   : > { %v1302_v59 = vmul.f32 1.442695, %v1266_v52  ;;  %v1304_v45 = vmul.f32 1.442695, %v1267_v53  ;;  %v1031_v53 = vld [vmem:[#allocation2 + $0x100] sm:$0xff] }
 0x378   : > { %v1225_v54 = vpop.xlane.xlu1 %1224 }
 0x379   : > { %2455 = vpow2.f32 %v1302_v59  ;;  %v1268_v55 = vsub.f32 %v3274_v51, %v1225_v54  ;;  %v1269_v47 = vsub.f32 %v3276_v1, %v1225_v54  ;;  %v1032_v59 = vld [vmem:[#allocation2 + $0x118] sm:$0xff] }
 0x37a   : > { %2457 = vpow2.f32 %v1304_v45  ;;  %v2292_v45 = vpack.c.bf16 %v1048_v43, %v1047_v50  ;;  %v2294_v54 = vpack.c.bf16 %v1032_v59, %v1031_v53 }
 0x37b   : > { %v3360_v61 = vpop.eup %2447  ;;  %v1306_v56 = vmul.f32 1.442695, %v1268_v55  ;;  %v1308_v57 = vmul.f32 1.442695, %v1269_v47 }
 0x37c   : > { %v3362_v58 = vpop.eup %2449  ;;  %v1228_v60 = vpop.xlane.xlu0 %1227  ;;  %2293 = vmatprep.subr.bf16.mxu1 %v2292_v45 }
 0x37d   : > { %2459 = vpow2.f32 %v1306_v56  ;;  %v1270_v63 = vsub.f32 %v3280_v3, %v1228_v60  ;;  %v1271_v7 = vsub.f32 %v3282_v4, %v1228_v60  ;;  %v1358_v62 = vadd.f32 %v3362_v58, %v3360_v61  ;;  %2295 = vmatpush3.bf16.msra.mxu1 %v2294_v54 }
 0x37e   : > { %2461 = vpow2.f32 %v1308_v57 }
 0x37f   : > { %v3368_v51 = vpop.eup %2451  ;;  %v1310_v1 = vmul.f32 1.442695, %v1270_v63  ;;  %v1312_v0 = vmul.f32 1.442695, %v1271_v7  ;;  %1359 = vadd.xlane.f32.xlu0 %v1358_v62  ;;  %v1050_v63 = vld [vmem:[#allocation2 + $0x2c8] sm:$0xff] }
 0x380   : > { %v3370_v2 = vpop.eup %2453  ;;  %v1231_v5 = vpop.xlane.xlu1 %1230 }
 0x381   : > { %2463 = vpow2.f32 %v1310_v1  ;;  %v1272_v9 = vsub.f32 %v3286_v6, %v1231_v5  ;;  %v1273_v12 = vsub.f32 %v3288_v8, %v1231_v5  ;;  %v1361_v3 = vadd.f32 %v3370_v2, %v3368_v51  ;;  %v1033_v1 = vld [vmem:[#allocation2 + $0x130] sm:$0xff] }
 0x382   : > { %2465 = vpow2.f32 %v1312_v0  ;;  %v1034_v0 = vld [vmem:[#allocation2 + $0x148] sm:$0xff] }
 0x383   : > { %v3376_v4 = vpop.eup %2455  ;;  %v1314_v15 = vmul.f32 1.442695, %v1272_v9  ;;  %v1316_v18 = vmul.f32 1.442695, %v1273_v12  ;;  %1362 = vadd.xlane.f32.xlu1 %v1361_v3  ;;  %v2298_v9 = vpack.c.bf16 %v1034_v0, %v1033_v1 }
 0x384   : > { %v3378_v21 = vpop.eup %2457  ;;  %v1234_v24 = vpop.xlane.xlu0 %1233 }
 0x385   : > { %2467 = vpow2.f32 %v1314_v15  ;;  %v1274_v27 = vsub.f32 %v3292_v10, %v1234_v24  ;;  %v1275_v30 = vsub.f32 %v3294_v11, %v1234_v24  ;;  %v1364_v6 = vadd.f32 %v3378_v21, %v3376_v4 }
 0x386   : > { %2469 = vpow2.f32 %v1316_v18 }
 0x387   : > { %v3384_v8 = vpop.eup %2459  ;;  %v1318_v33 = vmul.f32 1.442695, %v1274_v27  ;;  %v1320_v36 = vmul.f32 1.442695, %v1275_v30  ;;  %1365 = vadd.xlane.f32.xlu0 %v1364_v6 }
 0x388   : > { %v3386_v39 = vpop.eup %2461  ;;  %v1237_v40 = vpop.xlane.xlu1 %1236 }
 0x389   : > { %2471 = vpow2.f32 %v1318_v33  ;;  %v1276_v41 = vsub.f32 %v3298_v13, %v1237_v40  ;;  %v1277_v42 = vsub.f32 %v3300_v14, %v1237_v40  ;;  %v1367_v10 = vadd.f32 %v3386_v39, %v3384_v8  ;;  %v1035_v33 = vld [vmem:[#allocation2 + $0x160] sm:$0xff] }
 0x38a   : > { %2473 = vpow2.f32 %v1320_v36  ;;  %v1036_v36 = vld [vmem:[#allocation2 + $0x178] sm:$0xff] }
 0x38b   : > { %v3392_v11 = vpop.eup %2463  ;;  %v1322_v44 = vmul.f32 1.442695, %v1276_v41  ;;  %v1324_v46 = vmul.f32 1.442695, %v1277_v42  ;;  %1368 = vadd.xlane.f32.xlu1 %v1367_v10  ;;  %v2302_v41 = vpack.c.bf16 %v1036_v36, %v1035_v33 }
 0x38c   : > { %v3394_v48 = vpop.eup %2465  ;;  %v1240_v49 = vpop.xlane.xlu0 %1239 }
 0x38d   : > { %2475 = vpow2.f32 %v1322_v44  ;;  %v1278_v52 = vsub.f32 %v3304_v16, %v1240_v49  ;;  %v1279_v13 = vsub.f32 %v3306_v17, %v1240_v49  ;;  %v1370_v14 = vadd.f32 %v3394_v48, %v3392_v11  ;;  %v1049_v16 = vld [vmem:[#allocation2 + $0x2b0] sm:$0xff] }
 0x38e   : > { %2477 = vpow2.f32 %v1324_v46  ;;  %v2296_v5 = vpack.c.bf16 %v1050_v63, %v1049_v16 }
 0x38f   : > { %v3400_v55 = vpop.eup %2467  ;;  %v1326_v47 = vmul.f32 1.442695, %v1278_v52  ;;  %v1328_v56 = vmul.f32 1.442695, %v1279_v13  ;;  %1371 = vadd.xlane.f32.xlu0 %v1370_v14 }
 0x390   : > { %v3402_v57 = vpop.eup %2469  ;;  %v1243_v60 = vpop.xlane.xlu1 %1242  ;;  %2297 = vmatprep.subr.bf16.mxu1 %v2296_v5 }
 0x391   : > { %2479 = vpow2.f32 %v1326_v47  ;;  %v1280_v17 = vsub.f32 %v3310_v19, %v1243_v60  ;;  %v1281_v7 = vsub.f32 %v3312_v20, %v1243_v60  ;;  %v1373_v62 = vadd.f32 %v3402_v57, %v3400_v55  ;;  %v1051_v19 = vld [vmem:[#allocation2 + $0x2e0] sm:$0xff]  ;;  %v1052_v20 = vld [vmem:[#allocation2 + $0x2f8] sm:$0xff]  ;;  %2299 = vmatpush3.bf16.msra.mxu1 %v2298_v9 }
 0x392   : > { %2481 = vpow2.f32 %v1328_v56  ;;  %v2300_v40 = vpack.c.bf16 %v1052_v20, %v1051_v19 }
 0x393   : > { %v3408_v12 = vpop.eup %2471  ;;  %v1330_v3 = vmul.f32 1.442695, %v1280_v17  ;;  %v1332_v15 = vmul.f32 1.442695, %v1281_v7  ;;  %1374 = vadd.xlane.f32.xlu1 %v1373_v62 }
 0x394   : > { %v3410_v18 = vpop.eup %2473  ;;  %v1246_v24 = vpop.xlane.xlu0 %1245  ;;  %2301 = vmatprep.subr.bf16.mxu1 %v2300_v40 }
 0x395   : > { %2483 = vpow2.f32 %v1330_v3  ;;  %v1282_v27 = vsub.f32 %v3316_v22, %v1246_v24  ;;  %v1283_v30 = vsub.f32 %v3318_v23, %v1246_v24  ;;  %v1376_v6 = vadd.f32 %v3410_v18, %v3408_v12  ;;  %2303 = vmatpush3.bf16.msra.mxu1 %v2302_v41 }
 0x396   : > { %2485 = vpow2.f32 %v1332_v15 }
 0x397   : > { %v3416_v42 = vpop.eup %2475  ;;  %v1334_v10 = vmul.f32 1.442695, %v1282_v27  ;;  %v1336_v44 = vmul.f32 1.442695, %v1283_v30  ;;  %1377 = vadd.xlane.f32.xlu0 %v1376_v6 }
 0x398   : > { %v3418_v46 = vpop.eup %2477  ;;  %v1249_v49 = vpop.xlane.xlu1 %1248 }
 0x399   : > { %2487 = vpow2.f32 %v1334_v10  ;;  %v1284_v22 = vsub.f32 %v3322_v25, %v1249_v49  ;;  %v1285_v23 = vsub.f32 %v3324_v26, %v1249_v49  ;;  %v1379_v50 = vadd.f32 %v3418_v46, %v3416_v42 }
 0x39a   : > { %2489 = vpow2.f32 %v1336_v44 }
 0x39b   : > { %v3424_v43 = vpop.eup %2479  ;;  %v1338_v52 = vmul.f32 1.442695, %v1284_v22  ;;  %v1340_v13 = vmul.f32 1.442695, %v1285_v23  ;;  %1380 = vadd.xlane.f32.xlu1 %v1379_v50 }
 0x39c   : > { %v3426_v14 = vpop.eup %2481  ;;  %v1252_v53 = vpop.xlane.xlu0 %1251 }
 0x39d   : > { %2491 = vpow2.f32 %v1338_v52  ;;  %v1286_v59 = vsub.f32 %v3328_v28, %v1252_v53  ;;  %v1287_v25 = vsub.f32 %v3330_v29, %v1252_v53  ;;  %v1382_v26 = vadd.f32 %v3426_v14, %v3424_v43 }
 0x39e   : > { %2493 = vpow2.f32 %v1340_v13 }
 0x39f   : > { %v3432_v45 = vpop.eup %2483  ;;  %v1342_v54 = vmul.f32 1.442695, %v1286_v59  ;;  %v1344_v47 = vmul.f32 1.442695, %v1287_v25  ;;  %1383 = vadd.xlane.f32.xlu0 %v1382_v26 }
 0x3a0   : > { %v3434_v56 = vpop.eup %2485  ;;  %v1255_v60 = vpop.xlane.xlu1 %1254 }
 0x3a1   : > { %2495 = vpow2.f32 %v1342_v54  ;;  %v1288_v16 = vsub.f32 %v3334_v31, %v1255_v60  ;;  %v1289_v63 = vsub.f32 %v3336_v32, %v1255_v60  ;;  %v1385_v28 = vadd.f32 %v3434_v56, %v3432_v45 }
 0x3a2   : > { %2497 = vpow2.f32 %v1344_v47 }
 0x3a3   : > { %v3440_v29 = vpop.eup %2487  ;;  %v1346_v17 = vmul.f32 1.442695, %v1288_v16  ;;  %v1348_v7 = vmul.f32 1.442695, %v1289_v63  ;;  %1386 = vadd.xlane.f32.xlu1 %v1385_v28 }
 0x3a4   : > { %v3442_v62 = vpop.eup %2489  ;;  %v1258_v1 = vpop.xlane.xlu0 %1257 }
 0x3a5   : > { %2499 = vpow2.f32 %v1346_v17  ;;  %v1290_v0 = vsub.f32 %v3340_v34, %v1258_v1  ;;  %v1291_v5 = vsub.f32 %v3342_v35, %v1258_v1  ;;  %v1388_v31 = vadd.f32 %v3442_v62, %v3440_v29 }
 0x3a6   : > { %2501 = vpow2.f32 %v1348_v7 }
 0x3a7   : > { %v3448_v32 = vpop.eup %2491  ;;  %v1350_v9 = vmul.f32 1.442695, %v1290_v0  ;;  %v1352_v3 = vmul.f32 1.442695, %v1291_v5  ;;  %1389 = vadd.xlane.f32.xlu0 %v1388_v31 }
 0x3a8   : > { %v3450_v15 = vpop.eup %2493  ;;  %v1261_v24 = vpop.xlane.xlu1 %1260 }
 0x3a9   : > { %2503 = vpow2.f32 %v1350_v9  ;;  %v1292_v19 = vsub.f32 %v3346_v37, %v1261_v24  ;;  %v1293_v20 = vsub.f32 %v3348_v38, %v1261_v24  ;;  %v1391_v34 = vadd.f32 %v3450_v15, %v3448_v32 }
 0x3aa   : > { %2505 = vpow2.f32 %v1352_v3 }
 0x3ab   : > { %v3456_v35 = vpop.eup %2495  ;;  %v1354_v27 = vmul.f32 1.442695, %v1292_v19  ;;  %v1356_v30 = vmul.f32 1.442695, %v1293_v20  ;;  %1392 = vadd.xlane.f32.xlu1 %v1391_v34 }
 0x3ac   : > { %v3458_v6 = vpop.eup %2497 }
 0x3ad   : > { %2507 = vpow2.f32 %v1354_v27  ;;  %v1394_v33 = vadd.f32 %v3458_v6, %v3456_v35 }
 0x3ae   : > { %2509 = vpow2.f32 %v1356_v30 }
 0x3af   : > { %v3462_v36 = vpop.eup %2499  ;;  %1395 = vadd.xlane.f32.xlu0 %v1394_v33 }
 0x3b0   : > { %v3464_v37 = vpop.eup %2501 }
 0x3b1   : > { %v1397_v38 = vadd.f32 %v3464_v37, %v3462_v36 }
 0x3b3   : > { %v3468_v40 = vpop.eup %2503  ;;  %1398 = vadd.xlane.f32.xlu1 %v1397_v38 }
 0x3b4   : > { %v3470_v41 = vpop.eup %2505 }
 0x3b5   : > { %v1400_v10 = vadd.f32 %v3470_v41, %v3468_v40 }
 0x3b7   : > { %v3474_v44 = vpop.eup %2507  ;;  %1401 = vadd.xlane.f32.xlu0 %v1400_v10 }
 0x3b8   : > { %v3476_v49 = vpop.eup %2509 }
 0x3b9   : > { %v1403_v22 = vadd.f32 %v3476_v49, %v3474_v44 }
 0x3bb   : > { %1404 = vadd.xlane.f32.xlu1 %v1403_v22 }
 0x40c   : > { %v1360_v23 = vpop.xlane.xlu0 %1359 }
 0x40d   : > { %2511 = vrcp.f32 %v1360_v23 }
 0x410   : > { %v1363_v50 = vpop.xlane.xlu1 %1362 }
 0x411   : > { %2513 = vrcp.f32 %v1363_v50 }
 0x414   : > { %v1366_v52 = vpop.xlane.xlu0 %1365 }
 0x415   : > { %2515 = vrcp.f32 %v1366_v52 }
 0x417   : > { %v2512_v13 = vpop.eup %2511 }
 0x418   : > { %v1369_v53 = vpop.xlane.xlu1 %1368  ;;  %v1423_v59 = vmul.f32 %v2512_v13, %v3362_v58  ;;  %v1422_v25 = vmul.f32 %v2512_v13, %v3360_v61 }
 0x419   : > { %2517 = vrcp.f32 %v1369_v53 }
 0x41a   : > { %1518 = vmatprep.mubr.f32.mxu1 %v1423_v59  ;;  %1667 = vst [vmem:[%s3009_s1 + $0x8] sm:$0xff] %v1423_v59  ;;  %1666 = vst [vmem:[%s3009_s1] sm:$0xff] %v1422_v25 }
 0x41b   : > { %v2514_v26 = vpop.eup %2513  ;;  %1519 = vmatmul.mubr.f32.vlgmr.msra.gmra.mrb[0].mxu1 %v1422_v25 }
 0x41c   : > { %v1372_v54 = vpop.xlane.xlu0 %1371  ;;  %v1425_v47 = vmul.f32 %v2514_v26, %v3370_v2  ;;  %v1424_v60 = vmul.f32 %v2514_v26, %v3368_v51 }
 0x41d   : > { %2519 = vrcp.f32 %v1372_v54 }
 0x41e   : > { %1523 = vmatprep.mubr.f32.mxu1 %v1425_v47  ;;  %1669 = vst [vmem:[%s3009_s1 + $0x18] sm:$0xff] %v1425_v47  ;;  %1668 = vst [vmem:[%s3009_s1 + $0x10] sm:$0xff] %v1424_v60 }
 0x41f   : > { %v2516_v58 = vpop.eup %2515  ;;  %1524 = vmatmul.mubr.f32.gmra.mrb[2].mxu1 %v1424_v60 }
 0x420   : > { %v1375_v61 = vpop.xlane.xlu1 %1374  ;;  %v1427_v16 = vmul.f32 %v2516_v58, %v3378_v21  ;;  %v1426_v63 = vmul.f32 %v2516_v58, %v3376_v4 }
 0x421   : > { %2521 = vrcp.f32 %v1375_v61 }
 0x422   : > { %1528 = vmatprep.mubr.f32.mxu1 %v1427_v16  ;;  %1671 = vst [vmem:[%s3009_s1 + $0x28] sm:$0xff] %v1427_v16  ;;  %1670 = vst [vmem:[%s3009_s1 + $0x20] sm:$0xff] %v1426_v63 }
 0x423   : > { %v2518_v2 = vpop.eup %2517  ;;  %1529 = vmatmul.mubr.f32.gmra.mrb[4].mxu1 %v1426_v63 }
 0x424   : > { %v1378_v51 = vpop.xlane.xlu0 %1377  ;;  %v1429_v28 = vmul.f32 %v2518_v2, %v3386_v39  ;;  %v1428_v17 = vmul.f32 %v2518_v2, %v3384_v8 }
 0x425   : > { %2523 = vrcp.f32 %v1378_v51 }
 0x426   : > { %1533 = vmatprep.mubr.f32.mxu1 %v1429_v28  ;;  %1673 = vst [vmem:[%s3009_s1 + $0x38] sm:$0xff] %v1429_v28  ;;  %1672 = vst [vmem:[%s3009_s1 + $0x30] sm:$0xff] %v1428_v17 }
 0x427   : > { %v2520_v21 = vpop.eup %2519  ;;  %1534 = vmatmul.mubr.f32.gmra.mrb[6].mxu1 %v1428_v17 }
 0x428   : > { %v1381_v4 = vpop.xlane.xlu1 %1380  ;;  %v1431_v7 = vmul.f32 %v2520_v21, %v3394_v48  ;;  %v1430_v1 = vmul.f32 %v2520_v21, %v3392_v11 }
 0x429   : > { %2525 = vrcp.f32 %v1381_v4 }
 0x42a   : > { %1538 = vmatprep.mubr.f32.mxu1 %v1431_v7  ;;  %1675 = vst [vmem:[%s3009_s1 + $0x48] sm:$0xff] %v1431_v7  ;;  %1674 = vst [vmem:[%s3009_s1 + $0x40] sm:$0xff] %v1430_v1 }
 0x42b   : > { %v2522_v39 = vpop.eup %2521  ;;  %1539 = vmatmul.mubr.f32.gmra.mrb[8].mxu1 %v1430_v1 }
 0x42c   : > { %v1384_v8 = vpop.xlane.xlu0 %1383  ;;  %v1433_v0 = vmul.f32 %v2522_v39, %v3402_v57  ;;  %v1432_v5 = vmul.f32 %v2522_v39, %v3400_v55 }
 0x42d   : > { %2527 = vrcp.f32 %v1384_v8 }
 0x42e   : > { %1543 = vmatprep.mubr.f32.mxu1 %v1433_v0  ;;  %1677 = vst [vmem:[%s3009_s1 + $0x58] sm:$0xff] %v1433_v0  ;;  %1676 = vst [vmem:[%s3009_s1 + $0x50] sm:$0xff] %v1432_v5 }
 0x42f   : > { %v2524_v48 = vpop.eup %2523  ;;  %1544 = vmatmul.mubr.f32.gmra.mrb[10].mxu1 %v1432_v5 }
 0x430   : > { %v1387_v11 = vpop.xlane.xlu1 %1386  ;;  %v1435_v31 = vmul.f32 %v2524_v48, %v3410_v18  ;;  %v1434_v9 = vmul.f32 %v2524_v48, %v3408_v12 }
 0x431   : > { %2529 = vrcp.f32 %v1387_v11 }
 0x432   : > { %1548 = vmatprep.mubr.f32.mxu1 %v1435_v31  ;;  %1679 = vst [vmem:[%s3009_s1 + $0x68] sm:$0xff] %v1435_v31  ;;  %1678 = vst [vmem:[%s3009_s1 + $0x60] sm:$0xff] %v1434_v9 }
 0x433   : > { %v2526_v57 = vpop.eup %2525  ;;  %1549 = vmatmul.mubr.f32.gmra.mrb[12].mxu1 %v1434_v9 }
 0x434   : > { %v1390_v55 = vpop.xlane.xlu0 %1389  ;;  %v1437_v3 = vmul.f32 %v2526_v57, %v3418_v46  ;;  %v1436_v24 = vmul.f32 %v2526_v57, %v3416_v42 }
 0x435   : > { %2531 = vrcp.f32 %v1390_v55 }
 0x436   : > { %1553 = vmatprep.mubr.f32.mxu1 %v1437_v3  ;;  %1681 = vst [vmem:[%s3009_s1 + $0x78] sm:$0xff] %v1437_v3  ;;  %1680 = vst [vmem:[%s3009_s1 + $0x70] sm:$0xff] %v1436_v24 }
 0x437   : > { %v2528_v18 = vpop.eup %2527  ;;  %1554 = vmatmul.mubr.f32.gmra.mrb[14].mxu1 %v1436_v24 }
 0x438   : > { %v1393_v12 = vpop.xlane.xlu1 %1392  ;;  %v1439_v19 = vmul.f32 %v2528_v18, %v3426_v14  ;;  %v1438_v20 = vmul.f32 %v2528_v18, %v3424_v43 }
 0x439   : > { %2533 = vrcp.f32 %v1393_v12 }
 0x43a   : > { %1558 = vmatprep.mubr.f32.mxu1 %v1439_v19  ;;  %1683 = vst [vmem:[%s3009_s1 + $0x88] sm:$0xff] %v1439_v19  ;;  %1682 = vst [vmem:[%s3009_s1 + $0x80] sm:$0xff] %v1438_v20 }
 0x43b   : > { %v2530_v46 = vpop.eup %2529  ;;  %1559 = vmatmul.mubr.f32.gmra.mrb[16].mxu1 %v1438_v20 }
 0x43c   : > { %v1396_v42 = vpop.xlane.xlu0 %1395  ;;  %v1441_v34 = vmul.f32 %v2530_v46, %v3434_v56  ;;  %v1440_v27 = vmul.f32 %v2530_v46, %v3432_v45 }
 0x43d   : > { %2535 = vrcp.f32 %v1396_v42 }
 0x43e   : > { %1563 = vmatprep.mubr.f32.mxu1 %v1441_v34  ;;  %1685 = vst [vmem:[%s3009_s1 + $0x98] sm:$0xff] %v1441_v34  ;;  %1684 = vst [vmem:[%s3009_s1 + $0x90] sm:$0xff] %v1440_v27 }
 0x43f   : > { %v2532_v14 = vpop.eup %2531  ;;  %1564 = vmatmul.mubr.f32.gmra.mrb[18].mxu1 %v1440_v27 }
 0x440   : > { %v1399_v43 = vpop.xlane.xlu1 %1398  ;;  %v1443_v30 = vmul.f32 %v2532_v14, %v3442_v62  ;;  %v1442_v33 = vmul.f32 %v2532_v14, %v3440_v29 }
 0x441   : > { %2537 = vrcp.f32 %v1399_v43 }
 0x442   : > { %1568 = vmatprep.mubr.f32.mxu1 %v1443_v30  ;;  %1687 = vst [vmem:[%s3009_s1 + $0xa8] sm:$0xff] %v1443_v30  ;;  %1686 = vst [vmem:[%s3009_s1 + $0xa0] sm:$0xff] %v1442_v33 }
 0x443   : > { %v2534_v56 = vpop.eup %2533  ;;  %1569 = vmatmul.mubr.f32.gmra.mrb[20].mxu1 %v1442_v33 }
 0x444   : > { %v1402_v45 = vpop.xlane.xlu0 %1401  ;;  %v1445_v38 = vmul.f32 %v2534_v56, %v3450_v15  ;;  %v1444_v10 = vmul.f32 %v2534_v56, %v3448_v32 }
 0x445   : > { %2539 = vrcp.f32 %v1402_v45 }
 0x446   : > { %1573 = vmatprep.mubr.f32.mxu1 %v1445_v38  ;;  %1689 = vst [vmem:[%s3009_s1 + $0xb8] sm:$0xff] %v1445_v38  ;;  %1688 = vst [vmem:[%s3009_s1 + $0xb0] sm:$0xff] %v1444_v10 }
 0x447   : > { %v2536_v29 = vpop.eup %2535  ;;  %1574 = vmatmul.mubr.f32.gmra.mrb[22].mxu1 %v1444_v10 }
 0x448   : > { %v1405_v62 = vpop.xlane.xlu1 %1404  ;;  %v1447_v22 = vmul.f32 %v2536_v29, %v3458_v6  ;;  %v1446_v23 = vmul.f32 %v2536_v29, %v3456_v35 }
 0x449   : > { %2541 = vrcp.f32 %v1405_v62 }
 0x44a   : > { %1578 = vmatprep.mubr.f32.mxu1 %v1447_v22  ;;  %1691 = vst [vmem:[%s3009_s1 + $0xc8] sm:$0xff] %v1447_v22  ;;  %1690 = vst [vmem:[%s3009_s1 + $0xc0] sm:$0xff] %v1446_v23 }
 0x44b   : > { %v2538_v32 = vpop.eup %2537  ;;  %1579 = vmatmul.mubr.f32.gmra.mrb[24].mxu1 %v1446_v23 }
 0x44c   : > { %v1449_v15 = vmul.f32 %v2538_v32, %v3464_v37  ;;  %v1448_v50 = vmul.f32 %v2538_v32, %v3462_v36 }
 0x44e   : > { %1583 = vmatprep.mubr.f32.mxu1 %v1449_v15  ;;  %1693 = vst [vmem:[%s3009_s1 + $0xd8] sm:$0xff] %v1449_v15  ;;  %1692 = vst [vmem:[%s3009_s1 + $0xd0] sm:$0xff] %v1448_v50 }
 0x44f   : > { %v2540_v6 = vpop.eup %2539  ;;  %1584 = vmatmul.mubr.f32.gmra.mrb[26].mxu1 %v1448_v50 }
 0x450   : > { %v1451_v35 = vmul.f32 %v2540_v6, %v3470_v41  ;;  %v1450_v52 = vmul.f32 %v2540_v6, %v3468_v40 }
 0x452   : > { %1588 = vmatprep.mubr.f32.mxu1 %v1451_v35  ;;  %1695 = vst [vmem:[%s3009_s1 + $0xe8] sm:$0xff] %v1451_v35  ;;  %1694 = vst [vmem:[%s3009_s1 + $0xe0] sm:$0xff] %v1450_v52 }
 0x453   : > { %v2542_v37 = vpop.eup %2541  ;;  %1589 = vmatmul.mubr.f32.gmra.mrb[28].mxu1 %v1450_v52 }
 0x454   : > { %v1453_v36 = vmul.f32 %v2542_v37, %v3476_v49  ;;  %v1452_v13 = vmul.f32 %v2542_v37, %v3474_v44 }
 0x456   : > { %1593 = vmatprep.mubr.f32.mxu1 %v1453_v36  ;;  %1697 = vst [vmem:[%s3009_s1 + $0xf8] sm:$0xff] %v1453_v36  ;;  %1696 = vst [vmem:[%s3009_s1 + $0xf0] sm:$0xff] %v1452_v13  ;;  %s2605_s1 = sshll.u32 %s2768_s18, 4  ;;  %s2606_s1 = int_to_ptr.vmem [resolvable:$false] %s2605_s1 }
 0x457   : > { %1594 = vmatmul.mubr.f32.gmra.mrb[30].mxu1 %v1452_v13  ;;  %s2607_s19 = scalar_lea.vmem %s2606_s1, 8192  ;;  %p2608_p0 = scmp.lt.s32.totalorder %s3547_s11, %s2606_s1 }
 0x458   : > { %p2609_p2 = scmp.lt.s32.totalorder %s2607_s19, %s2601_s17 }
 0x45a   : > { %p2610_p5 = por %p2609_p2, %p2608_p0 }
 0x45c   : > { %p2611_p8 = pnand %p2610_p5, %p2604_p13 }
 0x45e   : > { %2614 = shalt.err (!%p2611_p8)
}
 0x45f   : > { %s2615_s27 = scalar_lea.hbm %s3552_s7, 4096  ;;  %s2619_s14 = scalar_lea.hbm %s3709_s5, 16384 }
 0x460   : > { %p2616_p12 = scmp.ne.s32.totalorder %s3552_s7, %s2615_s27  ;;  %p2620_p10 = scmp.lt.u32.totalorder %s3552_s7, %s3709_s5 }
 0x461   : > { %p2621_p3 = scmp.lt.u32.totalorder %s2619_s14, %s2615_s27  ;;  %p2623_p7 = scmp.lt.u32.totalorder %s2615_s27, %s3552_s7 }
 0x462   : > { %p2617_p1 = pnand %p2616_p12, %p3741_p9 }
 0x463   : > { %p2622_p4 = por %p2621_p3, %p2620_p10 }
 0x464   : > { %p2618_p6 = pneg %p2617_p1 }
 0x465   : > { %p2624_p11 = por %p2623_p7, %p2622_p4 }
 0x467   : > { %p2625_p13 = pnand %p2624_p11, %p2618_p6 }
 0x469   : > { %2628 = shalt.err (!%p2625_p13)
}
 0x46a   : > { %s2769_s17 = smov 256   ;;  %s2770_s18 = smov 16  }
 0x46b   : > { %2327 = dma.vmem_to_hbm [thread:$0]  (%p3741_p9), %s3547_s11, 4096, %s3552_s7, %s1704_s9, %s2769_s17, %s2769_s17, %s2770_s18  }
 0x46c   : > { %s1616_s1 = sld [smem:[#allocation3]]  ;;  %s3581_s19 = scalar_lea.vmem %s2992_s16, %s1888_s13 [#allocation4] }
 0x46d   : > { %v1600_v53 = vld [vmem:[%s3581_s19] sm:$0xff]  ;;  %v1601_v60 = vld [vmem:[%s3581_s19 + $0x8] sm:$0xff]  ;;  %v1602_v51 = vld [vmem:[%s3581_s19 + $0x10] sm:$0xff]  ;;  %s1892_s16 = sshll.u32 %s2743_s3, 4  ;;  %s1893_s13 = sshll.u32 %s2747_s26, 5 }
 0x46e   : > { %v1603_v1 = vld [vmem:[%s3581_s19 + $0x18] sm:$0xff]  ;;  %v1604_v11 = vld [vmem:[%s3581_s19 + $0x20] sm:$0xff]  ;;  %v1605_v24 = vld [vmem:[%s3581_s19 + $0x28] sm:$0xff]  ;;  %s1716_s11 = sadd.s32 %s1893_s13, %s1892_s16  ;;  %s1719_s9 = sshll.u32 %s3007_s6, 4  ;;  %s3640_s9 = int_to_ptr.vmem [resolvable:$true] %s1719_s9 }
 0x46f   : > { %v1606_v42 = vld [vmem:[%s3581_s19 + $0x30] sm:$0xff]  ;;  %v1607_v33 = vld [vmem:[%s3581_s19 + $0x38] sm:$0xff]  ;;  %v1608_v62 = vld [vmem:[%s3581_s19 + $0x40] sm:$0xff]  ;;  %s1894_s7 = sshll.u32 %s1716_s11, 7  ;;  %s3742_s27 = sld [smem:[#allocation22_spill]] }
 0x470   : > { %v1609_v6 = vld [vmem:[%s3581_s19 + $0x48] sm:$0xff]  ;;  %s1699_s14 = scalar_lea.sflag [#allocation6], %s3003_s20  ;;  %s2629_s12 = scalar_lea.vmem %s3640_s9, 2048 }
 0x471   : > { %p2630_p0 = scmp.ne.s32.totalorder %s3640_s9, %s2629_s12  ;;  %s2771_s30 = smov [#allocation9]  }
 0x472   : > { %v3583_v44 = vstv %s1616_s1  ;;  %s2633_s17 = sshll.u32 %s2771_s30, 4  ;;  %s2634_s17 = int_to_ptr.vmem [resolvable:$false] %s2633_s17 }
 0x473   : > { %p2631_p2 = pnand %p2630_p0, %p3741_p9  ;;  %s2635_s18 = scalar_lea.vmem %s2634_s17, 4096 }
 0x474   : > { %p2636_p8 = scmp.lt.s32.totalorder %s3640_s9, %s2634_s17  ;;  %p2637_p12 = scmp.lt.s32.totalorder %s2635_s18, %s2629_s12 }
 0x475   : > { %s3743_s4 = smov %s3742_s27  ;;  %s3638_s15 = scalar_lea.hbm %s3742_s27, %s1894_s7 }
 0x476   : > { %p2632_p5 = pneg %p2631_p2  ;;  %p2638_p1 = por %p2637_p12, %p2636_p8 }
 0x478   : > { %p2639_p6 = pnand %p2638_p1, %p2632_p5 }
 0x4ee   : > { %v2048_v40 = vpop.f32.mrb[0].mxu1 }
 0x4ef   : > { %v2049_v41 = vpop.f32.mrb[1].mxu1 }
 0x4f0   : > { %v2050_v49 = vadd.f32 %v2049_v41, %v2048_v40  ;;  %v1610_v40 = vld [vmem:[%s3581_s19 + $0x50] sm:$0xff] }
 0x4f2   : > { %v1618_v59 = vmul.f32 %v2050_v49, %v3583_v44  ;;  %v2051_v25 = vpop.f32.mrb[2].mxu1 }
 0x4f3   : > { %v2052_v26 = vpop.f32.mrb[3].mxu1 }
 0x4f4   : > { %v1634_v54 = vadd.f32 %v1618_v59, %v1600_v53  ;;  %v2053_v47 = vadd.f32 %v2052_v26, %v2051_v25  ;;  %v1611_v26 = vld [vmem:[%s3581_s19 + $0x58] sm:$0xff] }
 0x4f6   : > { %1650 = vst [vmem:[%s3007_s6] sm:$0xff] %v1634_v54  ;;  %v1619_v58 = vmul.f32 %v2053_v47, %v3583_v44  ;;  %v2054_v61 = vpop.f32.mrb[4].mxu1 }
 0x4f7   : > { %v2055_v16 = vpop.f32.mrb[5].mxu1 }
 0x4f8   : > { %v1635_v63 = vadd.f32 %v1619_v58, %v1601_v60  ;;  %v2056_v2 = vadd.f32 %v2055_v16, %v2054_v61  ;;  %v1612_v16 = vld [vmem:[%s3581_s19 + $0x60] sm:$0xff] }
 0x4fa   : > { %1651 = vst [vmem:[%s3007_s6 + $0x8] sm:$0xff] %v1635_v63  ;;  %v1620_v28 = vmul.f32 %v2056_v2, %v3583_v44  ;;  %v2057_v17 = vpop.f32.mrb[6].mxu1 }
 0x4fb   : > { %v2058_v21 = vpop.f32.mrb[7].mxu1 }
 0x4fc   : > { %v1636_v4 = vadd.f32 %v1620_v28, %v1602_v51  ;;  %v2059_v7 = vadd.f32 %v2058_v21, %v2057_v17  ;;  %v1613_v21 = vld [vmem:[%s3581_s19 + $0x68] sm:$0xff] }
 0x4fe   : > { %1652 = vst [vmem:[%s3007_s6 + $0x10] sm:$0xff] %v1636_v4  ;;  %v1621_v39 = vmul.f32 %v2059_v7, %v3583_v44  ;;  %v2060_v8 = vpop.f32.mrb[8].mxu1 }
 0x4ff   : > { %v2061_v0 = vpop.f32.mrb[9].mxu1 }
 0x500   : > { %v1637_v5 = vadd.f32 %v1621_v39, %v1603_v1  ;;  %v2062_v48 = vadd.f32 %v2061_v0, %v2060_v8  ;;  %v1614_v0 = vld [vmem:[%s3581_s19 + $0x70] sm:$0xff] }
 0x502   : > { %1653 = vst [vmem:[%s3007_s6 + $0x18] sm:$0xff] %v1637_v5  ;;  %v1622_v31 = vmul.f32 %v2062_v48, %v3583_v44  ;;  %v2063_v9 = vpop.f32.mrb[10].mxu1 }
 0x503   : > { %v2064_v57 = vpop.f32.mrb[11].mxu1 }
 0x504   : > { %v1638_v55 = vadd.f32 %v1622_v31, %v1604_v11  ;;  %v2065_v3 = vadd.f32 %v2064_v57, %v2063_v9  ;;  %v1615_v57 = vld [vmem:[%s3581_s19 + $0x78] sm:$0xff] }
 0x506   : > { %1654 = vst [vmem:[%s3007_s6 + $0x20] sm:$0xff] %v1638_v55  ;;  %v1623_v18 = vmul.f32 %v2065_v3, %v3583_v44  ;;  %v2066_v12 = vpop.f32.mrb[12].mxu1 }
 0x507   : > { %v2067_v19 = vpop.f32.mrb[13].mxu1 }
 0x508   : > { %v1639_v20 = vadd.f32 %v1623_v18, %v1605_v24  ;;  %v2068_v46 = vadd.f32 %v2067_v19, %v2066_v12 }
 0x50a   : > { %1655 = vst [vmem:[%s3007_s6 + $0x28] sm:$0xff] %v1639_v20  ;;  %v1624_v34 = vmul.f32 %v2068_v46, %v3583_v44  ;;  %v2069_v27 = vpop.f32.mrb[14].mxu1 }
 0x50b   : > { %v2070_v14 = vpop.f32.mrb[15].mxu1 }
 0x50c   : > { %v1640_v43 = vadd.f32 %v1624_v34, %v1606_v42  ;;  %v2071_v30 = vadd.f32 %v2070_v14, %v2069_v27 }
 0x50e   : > { %1656 = vst [vmem:[%s3007_s6 + $0x30] sm:$0xff] %v1640_v43  ;;  %v1625_v56 = vmul.f32 %v2071_v30, %v3583_v44  ;;  %v2072_v45 = vpop.f32.mrb[16].mxu1 }
 0x50f   : > { %v2073_v38 = vpop.f32.mrb[17].mxu1 }
 0x510   : > { %v1641_v10 = vadd.f32 %v1625_v56, %v1607_v33  ;;  %v2074_v29 = vadd.f32 %v2073_v38, %v2072_v45 }
 0x512   : > { %1657 = vst [vmem:[%s3007_s6 + $0x38] sm:$0xff] %v1641_v10  ;;  %v1626_v22 = vmul.f32 %v2074_v29, %v3583_v44  ;;  %v2075_v23 = vpop.f32.mrb[18].mxu1 }
 0x513   : > { %v2076_v32 = vpop.f32.mrb[19].mxu1 }
 0x514   : > { %v1642_v15 = vadd.f32 %v1626_v22, %v1608_v62  ;;  %v2077_v50 = vadd.f32 %v2076_v32, %v2075_v23 }
 0x516   : > { %1658 = vst [vmem:[%s3007_s6 + $0x40] sm:$0xff] %v1642_v15  ;;  %v1627_v35 = vmul.f32 %v2077_v50, %v3583_v44  ;;  %v2078_v52 = vpop.f32.mrb[20].mxu1 }
 0x517   : > { %v2079_v37 = vpop.f32.mrb[21].mxu1 }
 0x518   : > { %v1643_v36 = vadd.f32 %v1627_v35, %v1609_v6  ;;  %v2080_v13 = vadd.f32 %v2079_v37, %v2078_v52 }
 0x51a   : > { %1659 = vst [vmem:[%s3007_s6 + $0x48] sm:$0xff] %v1643_v36  ;;  %v1628_v41 = vmul.f32 %v2080_v13, %v3583_v44  ;;  %v2081_v49 = vpop.f32.mrb[22].mxu1 }
 0x51b   : > { %v2082_v53 = vpop.f32.mrb[23].mxu1 }
 0x51c   : > { %v1644_v59 = vadd.f32 %v1628_v41, %v1610_v40  ;;  %v2083_v25 = vadd.f32 %v2082_v53, %v2081_v49 }
 0x51e   : > { %1660 = vst [vmem:[%s3007_s6 + $0x50] sm:$0xff] %v1644_v59  ;;  %v1629_v54 = vmul.f32 %v2083_v25, %v3583_v44  ;;  %v2084_v47 = vpop.f32.mrb[24].mxu1 }
 0x51f   : > { %v2085_v60 = vpop.f32.mrb[25].mxu1 }
 0x520   : > { %v1645_v58 = vadd.f32 %v1629_v54, %v1611_v26  ;;  %v2086_v61 = vadd.f32 %v2085_v60, %v2084_v47 }
 0x522   : > { %1661 = vst [vmem:[%s3007_s6 + $0x58] sm:$0xff] %v1645_v58  ;;  %v1630_v63 = vmul.f32 %v2086_v61, %v3583_v44  ;;  %v2087_v2 = vpop.f32.mrb[26].mxu1 }
 0x523   : > { %v2088_v51 = vpop.f32.mrb[27].mxu1 }
 0x524   : > { %v1646_v28 = vadd.f32 %v1630_v63, %v1612_v16  ;;  %v2089_v17 = vadd.f32 %v2088_v51, %v2087_v2 }
 0x526   : > { %1662 = vst [vmem:[%s3007_s6 + $0x60] sm:$0xff] %v1646_v28  ;;  %v1631_v4 = vmul.f32 %v2089_v17, %v3583_v44  ;;  %v2090_v7 = vpop.f32.mrb[28].mxu1 }
 0x527   : > { %v2091_v1 = vpop.f32.mrb[29].mxu1 }
 0x528   : > { %v1647_v39 = vadd.f32 %v1631_v4, %v1613_v21  ;;  %v2092_v8 = vadd.f32 %v2091_v1, %v2090_v7 }
 0x52a   : > { %1663 = vst [vmem:[%s3007_s6 + $0x68] sm:$0xff] %v1647_v39  ;;  %v1632_v5 = vmul.f32 %v2092_v8, %v3583_v44  ;;  %v2093_v48 = vpop.f32.mrb[30].mxu1 }
 0x52b   : > { %v2094_v11 = vpop.f32.mrb[31].mxu1 }
 0x52c   : > { %v1648_v31 = vadd.f32 %v1632_v5, %v1614_v0  ;;  %v2095_v9 = vadd.f32 %v2094_v11, %v2093_v48 }
 0x52e   : > { %1664 = vst [vmem:[%s3007_s6 + $0x70] sm:$0xff] %v1648_v31  ;;  %v1633_v55 = vmul.f32 %v2095_v9, %v3583_v44 }
 0x530   : > { %v1649_v3 = vadd.f32 %v1633_v55, %v1615_v57 }
 0x532   : > { %1665 = vst [vmem:[%s3007_s6 + $0x78] sm:$0xff] %v1649_v3 }
 0x533   : > { %2642 = shalt.err (!%p2639_p6)
}
 0x534   : > { %s2643_s6 = scalar_lea.hbm %s3638_s15, 2048  ;;  %s2647_s16 = scalar_lea.hbm %s3743_s4, 8192 }
 0x535   : > { %p2644_p10 = scmp.ne.s32.totalorder %s3638_s15, %s2643_s6  ;;  %p2648_p7 = scmp.lt.u32.totalorder %s3638_s15, %s3743_s4 }
 0x536   : > { %p2649_p11 = scmp.lt.u32.totalorder %s2647_s16, %s2643_s6  ;;  %p2651_p0 = scmp.lt.u32.totalorder %s2643_s6, %s3638_s15 }
 0x537   : > { %p2645_p3 = pnand %p2644_p10, %p3741_p9 }
 0x538   : > { %p2650_p13 = por %p2649_p11, %p2648_p7 }
 0x539   : > { %p2646_p4 = pneg %p2645_p3 }
 0x53a   : > { %p2652_p2 = por %p2651_p0, %p2650_p13 }
 0x53c   : > { %p2653_p5 = pnand %p2652_p2, %p2646_p4 }
 0x53e   : > { %2656 = shalt.err (!%p2653_p5)
}
 0x53f   : > { %s2772_s7 = smov 128   ;;  %s2773_s3 = smov 8  }
 0x540   : > { %2326 = dma.vmem_to_hbm [thread:$0]  (%p3741_p9), %s3640_s9, 2048, %s3638_s15, %s1699_s14, %s2772_s7, %s2772_s7, %s2773_s3  }
 0x541 PF: > { %s3744_s26 = sld [smem:[#allocation16_spill]]  ;;  %s3745_s27 = sld [smem:[#allocation18_spill]] }
 0x542   : > { %p2348_p8 = scmp.ge.s32.totalorder %s2759_s29, 2 }
 0x547   : > { %s1753_s12 = sand.u32 1, %s3744_s26   ;;  %p3746_p12 = scmp.ne.s32.totalorder %s3745_s27, 0 }
 0x548   : > { %s1754_s30 = scalar_lea.sflag [#allocation6], %s1753_s12 }
 0x549   : > { %p2339_p1 = pnand %p2348_p8, %p3746_p12 }
 0x54b   : > { %2710 = dma.done.wait (!%p2339_p1), %s1754_s30, 2048  }
 0x54c   : > { %2712 = vsyncadd (!%p2339_p1), %s1754_s30, 4294965248  ;;  %s1763_s17 = scalar_lea.sflag [#allocation11], %s1753_s12 }
 0x54d   : > { %2714 = dma.done.wait (!%p2339_p1), %s1763_s17, 4096  }
 0x54e   : > { %2716 = vsyncadd (!%p2339_p1), %s1763_s17, 4294963200  ;;  %s27_s29 = sadd.s32 1, %s2759_s29   ;;  %s3747_s3 = sld [smem:[#allocation17_spill]] }
 0x54f   : > { %p24_p6 = scmp.ge.s32.totalorder %s27_s29, 6   ;;  %s3748_s27 = sld [smem:[#allocation19_spill]] }
 0x550   : > { %s3749_s10 = sld [smem:[#allocation20_spill]]  ;;  %s3750_s20 = smov %s2723_s21 }
 0x551   : > { %s3751_s21 = smov %s2727_s22  ;;  %s3752_s22 = smov %s2944_s23 }
 0x552   : > { %s3753_s23 = smov %s2735_s24  ;;  %s3754_s24 = smov %s2739_s25 }
 0x553   : > { %s3755_s25 = smov %s2939_s8  ;;  %s3756_s26 = smov %s2755_s28 }
 0x554   :  { %26 = sbr.rel (!%p24_p6) target bundleno = 16 (0x10), region = 108 }
 0x556   : > { %s3757_s28 = smov %s3749_s10 }
 0x55b   :  { %1768 = vsyncpa [#allocation5], 1 }
 0x55c   :  { %1770 = vsyncpa [#allocation5 + $0x1], 1 }
 0x55d   :  { %1771 = vsyncpa [#allocation8], 1 }
 0x55e   :  { %1772 = vsyncpa [#allocation6], 1 }
 0x55f   :  { %1774 = vsyncpa [#allocation6 + $0x1], 1 }
 0x560   :  { %1775 = vsyncpa [#allocation11], 1 }
 0x561   :  { %1777 = vsyncpa [#allocation11 + $0x1], 1 }

</bundles_post_ra>
